<compile_context>
chip_gen: v6e
topology: v6e:2x2x1
jax: 0.10.0
libtpu: 0.0.40
codegen_flags: <defaults>
</compile_context>

<pallas_src>
import functools

import jax
import jax.numpy as jnp
import numpy as np
from jax import lax
from jax.experimental import pallas as pl
from jax.experimental.pallas import tpu as pltpu

EPS = 1e-5
LANE = 128


# ---------------------------------------------------------------------------
# Fused kernel
# ---------------------------------------------------------------------------
def _bottleneck_kernel(*refs, th, w, cin, cmid, cout, has_halo):
    if has_halo:
        (x_ref, xt_ref, xb_ref, w1_ref, w2_ref, w3_ref,
         b1_ref, b2_ref, b3_ref, o_ref) = refs
    else:
        (x_ref, w1_ref, w2_ref, w3_ref,
         b1_ref, b2_ref, b3_ref, o_ref) = refs

    x = x_ref[0]                                         # (th, W, Cin) bf16

    # ---- conv1 (1x1; bn1 scale folded into w1) + bias + relu --------------
    def conv1(inp, rows):
        t = jnp.dot(inp.reshape(rows * w, cin), w1_ref[...],
                    preferred_element_type=jnp.float32)
        t = jnp.maximum(t + b1_ref[...], 0.0)
        return t.astype(jnp.bfloat16).reshape(rows, w, cmid)

    t1_main = conv1(x, th)
    zrow = jnp.zeros((1, w, cmid), jnp.bfloat16)
    if has_halo:
        r = pl.program_id(1)
        nrt = pl.num_programs(1)
        # conv1 recomputed on the two single halo rows; rows that fall outside
        # the image are conv2's zero padding (zero AFTER conv1/bn1/relu).
        t1_top = jnp.where(r > 0, conv1(xt_ref[0], 1), zrow)
        t1_bot = jnp.where(r < nrt - 1, conv1(xb_ref[0], 1), zrow)
    else:
        t1_top = zrow
        t1_bot = zrow
    # Only the small bf16 t1 rows are concatenated (not the f32/bf16 x block).
    t1 = jnp.concatenate([t1_top, t1_main, t1_bot], axis=0)  # (th+2, W, Cmid)

    # ---- conv2 (3x3, pad=1; bn2 scale folded into w2) + bias + relu -------
    # Lazy per-kx shifted tap (one zero-column concat each) -> 9 K=Cmid MXU
    # matmuls accumulated in f32; accumulator initialized to the bias.
    zc = jnp.zeros((th + 2, 1, cmid), jnp.bfloat16)
    acc = jnp.broadcast_to(b2_ref[...], (th * w, cmid)).astype(jnp.float32)
    for kx in range(3):
        if kx == 0:       # left neighbour: xs[:, x] = t1[:, x-1], col 0 -> 0
            xs = jnp.concatenate([zc, t1[:, :w - 1, :]], axis=1)
        elif kx == 2:     # right neighbour: xs[:, x] = t1[:, x+1], col W-1 -> 0
            xs = jnp.concatenate([t1[:, 1:, :], zc], axis=1)
        else:
            xs = t1
        xs = xs.reshape((th + 2) * w, cmid)
        for ky in range(3):
            acc = acc + jnp.dot(xs[ky * w:(ky + th) * w],
                                w2_ref[ky * 3 + kx],
                                preferred_element_type=jnp.float32)
    t2 = jnp.maximum(acc, 0.0).astype(jnp.bfloat16)

    # ---- conv3 (1x1; bn3 scale folded into w3) + bias + residual + relu ---
    y = jnp.dot(t2, w3_ref[...], preferred_element_type=jnp.float32)
    y = y + b3_ref[...]
    y = y + x.reshape(th * w, cout).astype(jnp.float32)   # identity residual
    y = jnp.maximum(y, 0.0)
    o_ref[...] = y.reshape(1, th, w, cout).astype(o_ref.dtype)


# ---------------------------------------------------------------------------
# Helpers
# ---------------------------------------------------------------------------
def _fold_bn(gamma, beta, mean, var):
    scale = gamma / jnp.sqrt(var + EPS)
    bias = beta - mean * scale
    return scale, bias


def _round_up(n, m):
    return ((n + m - 1) // m) * m


def _pad_axis(a, axis, target):
    pad = target - a.shape[axis]
    if pad == 0:
        return a
    widths = [(0, 0)] * a.ndim
    widths[axis] = (0, pad)
    return jnp.pad(a, widths)


def _vmem_budget_bytes():
    """Per-generation VMEM budget (v5e/v6e: ~90 MiB of 128; v7x: ~45 of 64)."""
    phys = 128 * 1024 * 1024
    try:
        phys = int(pltpu.get_tpu_info().vmem_capacity_bytes)
    except Exception:
        pass
    return min(int(phys * 0.70), 96 * 1024 * 1024)


def _estimate_vmem_bytes(th, w, cin, cmid, cout, weight_bytes):
    """Real per-step footprint: double-buffered I/O + weights + temporaries."""
    in_blk = th * w * cin * 2            # bf16 activation block
    out_blk = th * w * cout * 4          # f32 output block
    halo = 2 * w * cin * 2               # two single halo rows (bf16)
    io = 2 * (in_blk + out_blk + halo)   # pipeline double-buffering
    # in-kernel temporaries: t1 (bf16) + one shifted tap (bf16) + acc/y (f32)
    tmp = (th + 2) * w * cmid * 2 * 2 + th * w * cmid * 4 + th * w * cout * 4
    return io + 2 * weight_bytes + int(tmp * 1.5)


def _pick_row_tile(h, w, cin, cmid, cout, weight_bytes, budget,
                   max_th=None, prefer_split=False):
    """Largest divisor of h whose full per-step footprint fits the budget."""
    # TODO(synk): non-divisor row tiles (awkward / prime H) degrade to th=1.
    divs = [d for d in range(1, h + 1) if h % d == 0]
    if max_th is not None:
        divs = [d for d in divs if d <= max_th] or [1]
    fitting = [d for d in divs
               if _estimate_vmem_bytes(d, w, cin, cmid, cout, weight_bytes)
               <= budget]
    best = max(fitting) if fitting else 1
    if prefer_split and best == h:       # keep N*rt >= 2 for megacore (v7x)
        smaller = [d for d in divs if d < h]
        if smaller:
            best = max(smaller)
    return best


# ---------------------------------------------------------------------------
# Forward wrapper (NCHW in / NCHW out, like the PyTorch module)
# ---------------------------------------------------------------------------
def bottleneck_forward(x_nchw, params, *, max_row_tile=None):
    """Bottleneck_Baseline.forward, eval-mode BN (stride=1, downsample=None)."""
    # TODO(synk): stride > 1 / non-None `downsample` branch not implemented.
    # NCHW -> NHWC is module-interface glue; a full network would stay NHWC
    # with 128-multiple channels end-to-end and skip these wrapper passes.
    x = jnp.transpose(x_nchw, (0, 2, 3, 1)).astype(jnp.float32)
    N, H, W, cin = x.shape

    # PyTorch conv weights are (Cout, Cin, kh, kw); convert once (glue).
    w1 = jnp.transpose(params["w1"][:, :, 0, 0], (1, 0))   # (Cin, planes)
    w2 = jnp.transpose(params["w2"], (2, 3, 1, 0))         # (3,3,planes,planes)
    w3 = jnp.transpose(params["w3"][:, :, 0, 0], (1, 0))   # (planes, 4*planes)
    s1, b1 = _fold_bn(*params["bn1"])
    s2, b2 = _fold_bn(*params["bn2"])
    s3, b3 = _fold_bn(*params["bn3"])
    # Fold BN scales into the conv weights in f32, BEFORE the bf16 cast.
    w1 = w1 * s1[None, :]
    w2 = w2 * s2[None, None, None, :]
    w3 = w3 * s3[None, :]

    planes = w1.shape[1]
    cout = w3.shape[1]
    assert cin == cout, "identity residual requires inplanes == planes*4"

    # Lane-dense channel padding (multiples of 128); padded channels stay
    # exactly zero end-to-end and are sliced off at the end if needed.
    cp_in = _round_up(cin, LANE)
    cp_mid = _round_up(planes, LANE)
    cp_out = _round_up(cout, LANE)

    # bf16 activation DMA halves input HBM traffic on the mem-bound path.
    xp = _pad_axis(x, 3, cp_in).astype(jnp.bfloat16)
    w1p = _pad_axis(_pad_axis(w1, 0, cp_in), 1, cp_mid).astype(jnp.bfloat16)
    w2p = _pad_axis(_pad_axis(w2, 2, cp_mid), 3, cp_mid)
    w2p = w2p.reshape(9, cp_mid, cp_mid).astype(jnp.bfloat16)  # [ky*3+kx]
    w3p = _pad_axis(_pad_axis(w3, 0, cp_mid), 1, cp_out).astype(jnp.bfloat16)
    b1p = _pad_axis(b1, 0, cp_mid).reshape(1, cp_mid).astype(jnp.float32)
    b2p = _pad_axis(b2, 0, cp_mid).reshape(1, cp_mid).astype(jnp.float32)
    b3p = _pad_axis(b3, 0, cp_out).reshape(1, cp_out).astype(jnp.float32)

    weight_bytes = ((w1p.size + w2p.size + w3p.size) * 2
                    + (b1p.size + b2p.size + b3p.size) * 4)
    budget = _vmem_budget_bytes()
    th = _pick_row_tile(H, W, cp_in, cp_mid, cp_out, weight_bytes, budget,
                        max_th=max_row_tile, prefer_split=(N == 1))
    rt = H // th
    has_halo = rt > 1

    kernel = functools.partial(_bottleneck_kernel, th=th, w=W,
                               cin=cp_in, cmid=cp_mid, cout=cp_out,
                               has_halo=has_halo)

    m = N * H * W
    flops = 2 * m * (cp_in * cp_mid + 9 * cp_mid * cp_mid + cp_mid * cp_out)
    bytes_accessed = int(m * cp_in * 2 + m * cp_out * 4
                         + (2 * N * rt * W * cp_in * 2 if has_halo else 0)
                         + weight_bytes)

    x_spec = pl.BlockSpec((1, th, W, cp_in), lambda n, r: (n, r, 0, 0))
    const_specs = [
        # grid-invariant weights / biases (constant index_map -> stay resident)
        pl.BlockSpec((cp_in, cp_mid), lambda n, r: (0, 0)),
        pl.BlockSpec((9, cp_mid, cp_mid), lambda n, r: (0, 0, 0)),
        pl.BlockSpec((cp_mid, cp_out), lambda n, r: (0, 0)),
        pl.BlockSpec((1, cp_mid), lambda n, r: (0, 0)),
        pl.BlockSpec((1, cp_mid), lambda n, r: (0, 0)),
        pl.BlockSpec((1, cp_out), lambda n, r: (0, 0)),
    ]

    if has_halo:
        in_specs = [
            x_spec,
            # single halo row above / below (clamped at borders; zeroed in-kernel)
            pl.BlockSpec((1, 1, W, cp_in),
                         lambda n, r: (n, jnp.maximum(r * th - 1, 0), 0, 0)),
            pl.BlockSpec((1, 1, W, cp_in),
                         lambda n, r: (n, jnp.minimum(r * th + th, H - 1), 0, 0)),
        ] + const_specs
        operands = (xp, xp, xp, w1p, w2p, w3p, b1p, b2p, b3p)
    else:
        in_specs = [x_spec] + const_specs
        operands = (xp, w1p, w2p, w3p, b1p, b2p, b3p)

    out = pl.pallas_call(
        kernel,
        out_shape=jax.ShapeDtypeStruct((N, H, W, cp_out), jnp.float32),
        grid=(N, rt),
        in_specs=in_specs,
        out_specs=pl.BlockSpec((1, th, W, cp_out), lambda n, r: (n, r, 0, 0)),
        compiler_params=pltpu.CompilerParams(
            dimension_semantics=("parallel", "parallel"),
            vmem_limit_bytes=budget),
        cost_estimate=pl.CostEstimate(flops=flops, transcendentals=0,
                                      bytes_accessed=bytes_accessed),
    )(*operands)

    if cp_out != cout:
        out = out[..., :cout]
    return jnp.transpose(out, (0, 3, 1, 2))                      # -> NCHW


# ---------------------------------------------------------------------------
# Pure-JAX reference (for correctness check only)
# ---------------------------------------------------------------------------
def ref_forward(x_nchw, params):
    x = jnp.transpose(x_nchw, (0, 2, 3, 1)).astype(jnp.float32)

    def conv(t, w_oihw, pad):
        w = jnp.transpose(w_oihw, (2, 3, 1, 0))  # HWIO
        return jax.lax.conv_general_dilated(
            t, w, (1, 1), [(pad, pad), (pad, pad)],
            dimension_numbers=("NHWC", "HWIO", "NHWC"))

    def bn(t, g, b, m, v):
        return (t - m) / jnp.sqrt(v + EPS) * g + b

    out = jax.nn.relu(bn(conv(x, params["w1"], 0), *params["bn1"]))
    out = jax.nn.relu(bn(conv(out, params["w2"], 1), *params["bn2"]))
    out = bn(conv(out, params["w3"], 0), *params["bn3"])
    out = jax.nn.relu(out + x)
    return jnp.transpose(out, (0, 3, 1, 2))


# ---------------------------------------------------------------------------
if __name__ == "__main__":
    # inplanes = planes * expansion so the identity residual is valid
    # (downsample=None), matching the module's default configuration.
    N, inplanes, planes, H, W = 2, 16, 4, 16, 16
    expansion = 4
    outplanes = planes * expansion  # == inplanes

    key = jax.random.PRNGKey(0)
    keys = jax.random.split(key, 8)

    def bn_params(k, c):
        k1, k2, k3, k4 = jax.random.split(k, 4)
        gamma = 1.0 + 0.1 * jax.random.normal(k1, (c,), jnp.float32)
        beta = 0.1 * jax.random.normal(k2, (c,), jnp.float32)
        mean = 0.1 * jax.random.normal(k3, (c,), jnp.float32)
        var = 1.0 + 0.1 * jax.random.uniform(k4, (c,), jnp.float32)
        return (gamma, beta, mean, var)

    params = {
        "w1": 0.2 * jax.random.normal(keys[0], (planes, inplanes, 1, 1), jnp.float32),
        "w2": 0.2 * jax.random.normal(keys[1], (planes, planes, 3, 3), jnp.float32),
        "w3": 0.2 * jax.random.normal(keys[2], (outplanes, planes, 1, 1), jnp.float32),
        "bn1": bn_params(keys[3], planes),
        "bn2": bn_params(keys[4], planes),
        "bn3": bn_params(keys[5], outplanes),
    }

    x = jax.random.normal(keys[6], (N, inplanes, H, W), jnp.float32)

    ref = jax.block_until_ready(ref_forward(x, params))

    # Path 1: auto tile (whole image fits one tile -> rt == 1, halo-free path).
    fwd_full = jax.jit(bottleneck_forward)
    out_full = jax.block_until_ready(fwd_full(x, params))
    # Path 2: forced smaller row tile -> exercises the multi-tile halo path.
    fwd_tiled = jax.jit(functools.partial(bottleneck_forward, max_row_tile=4))
    out_tiled = jax.block_until_ready(fwd_tiled(x, params))

    assert out_full.shape == (N, outplanes, H, W)
    assert out_tiled.shape == (N, outplanes, H, W)
    # bf16 activation I/O + bf16 MXU matmuls (f32 accumulation) vs the
    # all-f32 XLA reference -> slightly loosened tolerance.
    for name, out in (("full-tile", out_full), ("halo-tiled", out_tiled)):
        assert np.allclose(np.asarray(out), np.asarray(ref),
                           atol=4e-2, rtol=4e-2), \
            f"Pallas output mismatch vs reference ({name})"

    print("KERNEL_OK")
</pallas_src>

<mosaic_0001>
module attributes {stable_mosaic.version = 11 : i64} {
  func.func @_bottleneck_kernel(%arg0: i32, %arg1: i32, %arg2: memref<1x16x16x128xbf16, #tpu.memory_space<vmem>>, %arg3: memref<128x128xbf16, #tpu.memory_space<vmem>>, %arg4: memref<9x128x128xbf16, #tpu.memory_space<vmem>>, %arg5: memref<128x128xbf16, #tpu.memory_space<vmem>>, %arg6: memref<1x128xf32, #tpu.memory_space<vmem>>, %arg7: memref<1x128xf32, #tpu.memory_space<vmem>>, %arg8: memref<1x128xf32, #tpu.memory_space<vmem>>, %arg9: memref<1x16x16x128xf32, #tpu.memory_space<vmem>>) attributes {dimension_semantics = [#tpu.dimension_semantics<parallel>, #tpu.dimension_semantics<parallel>], iteration_bounds = array<i64: 2, 1>, scalar_prefetch = 0 : i64, scratch_operands = 0 : i64, tpu.core_type = #tpu.core_type<tc>, window_params = [{transform_indices = @transform_0, window_bounds = array<i64: 1, 16, 16, 128>}, {pipeline_mode = #tpu.pipeline_mode<synchronous>, transform_indices = @transform_1, window_bounds = array<i64: 128, 128>}, {pipeline_mode = #tpu.pipeline_mode<synchronous>, transform_indices = @transform_2, window_bounds = array<i64: 9, 128, 128>}, {pipeline_mode = #tpu.pipeline_mode<synchronous>, transform_indices = @transform_3, window_bounds = array<i64: 128, 128>}, {pipeline_mode = #tpu.pipeline_mode<synchronous>, transform_indices = @transform_4, window_bounds = array<i64: 1, 128>}, {pipeline_mode = #tpu.pipeline_mode<synchronous>, transform_indices = @transform_5, window_bounds = array<i64: 1, 128>}, {pipeline_mode = #tpu.pipeline_mode<synchronous>, transform_indices = @transform_6, window_bounds = array<i64: 1, 128>}, {transform_indices = @transform_7, window_bounds = array<i64: 1, 16, 16, 128>}]} {
    %c0 = arith.constant 0 : index
    %c0_0 = arith.constant 0 : index
    %c0_1 = arith.constant 0 : index
    %c0_2 = arith.constant 0 : index
    %0 = vector.load %arg2[%c0, %c0_0, %c0_1, %c0_2] : memref<1x16x16x128xbf16, #tpu.memory_space<vmem>>, vector<1x16x16x128xbf16>
    %1 = vector.shape_cast %0 : vector<1x16x16x128xbf16> to vector<16x16x128xbf16>
    %2 = vector.shape_cast %1 : vector<16x16x128xbf16> to vector<256x128xbf16>
    %c0_3 = arith.constant 0 : index
    %c0_4 = arith.constant 0 : index
    %3 = vector.load %arg3[%c0_3, %c0_4] : memref<128x128xbf16, #tpu.memory_space<vmem>>, vector<128x128xbf16>
    %cst = arith.constant dense<0.000000e+00> : vector<256x128xf32>
    %4 = tpu.matmul %2, %3, %cst {dimension_numbers = #tpu.dot_dimension_numbers<[1], [0], [0], [1], [0, 0, 1, 1], [], []>} : vector<256x128xbf16>, vector<128x128xbf16>, vector<256x128xf32> -> vector<256x128xf32>
    %c0_5 = arith.constant 0 : index
    %c0_6 = arith.constant 0 : index
    %5 = vector.load %arg6[%c0_5, %c0_6] : memref<1x128xf32, #tpu.memory_space<vmem>>, vector<1x128xf32>
    %6 = vector.broadcast %5 : vector<1x128xf32> to vector<256x128xf32>
    %7 = arith.addf %4, %6 : vector<256x128xf32>
    %cst_7 = arith.constant 0.000000e+00 : f32
    %8 = vector.broadcast %cst_7 : f32 to vector<256x128xf32>
    %9 = arith.maximumf %7, %8 : vector<256x128xf32>
    %10 = arith.truncf %9 : vector<256x128xf32> to vector<256x128xbf16>
    %11 = vector.shape_cast %10 : vector<256x128xbf16> to vector<16x16x128xbf16>
    %cst_8 = arith.constant 0.000000e+00 : bf16
    %12 = vector.broadcast %cst_8 : bf16 to vector<1x16x128xbf16>
    %13 = tpu.concatenate %12, %11, %12 in 0 : vector<1x16x128xbf16>, vector<16x16x128xbf16>, vector<1x16x128xbf16> -> vector<18x16x128xbf16>
    %cst_9 = arith.constant 0.000000e+00 : bf16
    %14 = vector.broadcast %cst_9 : bf16 to vector<18x1x128xbf16>
    %c0_10 = arith.constant 0 : index
    %c0_11 = arith.constant 0 : index
    %15 = vector.load %arg7[%c0_10, %c0_11] : memref<1x128xf32, #tpu.memory_space<vmem>>, vector<1x128xf32>
    %16 = vector.shape_cast %15 : vector<1x128xf32> to vector<1x128xf32>
    %17 = vector.broadcast %16 : vector<1x128xf32> to vector<256x128xf32>
    %18 = vector.extract_strided_slice %13 {offsets = [0, 0, 0], sizes = [18, 15, 128], strides = [1, 1, 1]} : vector<18x16x128xbf16> to vector<18x15x128xbf16>
    %19 = tpu.concatenate %14, %18 in 1 : vector<18x1x128xbf16>, vector<18x15x128xbf16> -> vector<18x16x128xbf16>
    %20 = vector.shape_cast %19 : vector<18x16x128xbf16> to vector<288x128xbf16>
    %21 = vector.extract_strided_slice %20 {offsets = [0, 0], sizes = [256, 128], strides = [1, 1]} : vector<288x128xbf16> to vector<256x128xbf16>
    %c0_12 = arith.constant 0 : index
    %c0_13 = arith.constant 0 : index
    %c0_14 = arith.constant 0 : index
    %22 = vector.load %arg4[%c0_12, %c0_13, %c0_14] : memref<9x128x128xbf16, #tpu.memory_space<vmem>>, vector<1x128x128xbf16>
    %23 = vector.shape_cast %22 : vector<1x128x128xbf16> to vector<128x128xbf16>
    %cst_15 = arith.constant dense<0.000000e+00> : vector<256x128xf32>
    %24 = tpu.matmul %21, %23, %cst_15 {dimension_numbers = #tpu.dot_dimension_numbers<[1], [0], [0], [1], [0, 0, 1, 1], [], []>} : vector<256x128xbf16>, vector<128x128xbf16>, vector<256x128xf32> -> vector<256x128xf32>
    %25 = arith.addf %17, %24 : vector<256x128xf32>
    %26 = vector.extract_strided_slice %20 {offsets = [16, 0], sizes = [256, 128], strides = [1, 1]} : vector<288x128xbf16> to vector<256x128xbf16>
    %c3 = arith.constant 3 : index
    %c0_16 = arith.constant 0 : index
    %c0_17 = arith.constant 0 : index
    %27 = vector.load %arg4[%c3, %c0_16, %c0_17] : memref<9x128x128xbf16, #tpu.memory_space<vmem>>, vector<1x128x128xbf16>
    %28 = vector.shape_cast %27 : vector<1x128x128xbf16> to vector<128x128xbf16>
    %cst_18 = arith.constant dense<0.000000e+00> : vector<256x128xf32>
    %29 = tpu.matmul %26, %28, %cst_18 {dimension_numbers = #tpu.dot_dimension_numbers<[1], [0], [0], [1], [0, 0, 1, 1], [], []>} : vector<256x128xbf16>, vector<128x128xbf16>, vector<256x128xf32> -> vector<256x128xf32>
    %30 = arith.addf %25, %29 : vector<256x128xf32>
    %31 = vector.extract_strided_slice %20 {offsets = [32, 0], sizes = [256, 128], strides = [1, 1]} : vector<288x128xbf16> to vector<256x128xbf16>
    %c6 = arith.constant 6 : index
    %c0_19 = arith.constant 0 : index
    %c0_20 = arith.constant 0 : index
    %32 = vector.load %arg4[%c6, %c0_19, %c0_20] : memref<9x128x128xbf16, #tpu.memory_space<vmem>>, vector<1x128x128xbf16>
    %33 = vector.shape_cast %32 : vector<1x128x128xbf16> to vector<128x128xbf16>
    %cst_21 = arith.constant dense<0.000000e+00> : vector<256x128xf32>
    %34 = tpu.matmul %31, %33, %cst_21 {dimension_numbers = #tpu.dot_dimension_numbers<[1], [0], [0], [1], [0, 0, 1, 1], [], []>} : vector<256x128xbf16>, vector<128x128xbf16>, vector<256x128xf32> -> vector<256x128xf32>
    %35 = arith.addf %30, %34 : vector<256x128xf32>
    %36 = vector.shape_cast %13 : vector<18x16x128xbf16> to vector<288x128xbf16>
    %37 = vector.extract_strided_slice %36 {offsets = [0, 0], sizes = [256, 128], strides = [1, 1]} : vector<288x128xbf16> to vector<256x128xbf16>
    %c1 = arith.constant 1 : index
    %c0_22 = arith.constant 0 : index
    %c0_23 = arith.constant 0 : index
    %38 = vector.load %arg4[%c1, %c0_22, %c0_23] : memref<9x128x128xbf16, #tpu.memory_space<vmem>>, vector<1x128x128xbf16>
    %39 = vector.shape_cast %38 : vector<1x128x128xbf16> to vector<128x128xbf16>
    %cst_24 = arith.constant dense<0.000000e+00> : vector<256x128xf32>
    %40 = tpu.matmul %37, %39, %cst_24 {dimension_numbers = #tpu.dot_dimension_numbers<[1], [0], [0], [1], [0, 0, 1, 1], [], []>} : vector<256x128xbf16>, vector<128x128xbf16>, vector<256x128xf32> -> vector<256x128xf32>
    %41 = arith.addf %35, %40 : vector<256x128xf32>
    %42 = vector.extract_strided_slice %36 {offsets = [16, 0], sizes = [256, 128], strides = [1, 1]} : vector<288x128xbf16> to vector<256x128xbf16>
    %c4 = arith.constant 4 : index
    %c0_25 = arith.constant 0 : index
    %c0_26 = arith.constant 0 : index
    %43 = vector.load %arg4[%c4, %c0_25, %c0_26] : memref<9x128x128xbf16, #tpu.memory_space<vmem>>, vector<1x128x128xbf16>
    %44 = vector.shape_cast %43 : vector<1x128x128xbf16> to vector<128x128xbf16>
    %cst_27 = arith.constant dense<0.000000e+00> : vector<256x128xf32>
    %45 = tpu.matmul %42, %44, %cst_27 {dimension_numbers = #tpu.dot_dimension_numbers<[1], [0], [0], [1], [0, 0, 1, 1], [], []>} : vector<256x128xbf16>, vector<128x128xbf16>, vector<256x128xf32> -> vector<256x128xf32>
    %46 = arith.addf %41, %45 : vector<256x128xf32>
    %47 = vector.extract_strided_slice %36 {offsets = [32, 0], sizes = [256, 128], strides = [1, 1]} : vector<288x128xbf16> to vector<256x128xbf16>
    %c7 = arith.constant 7 : index
    %c0_28 = arith.constant 0 : index
    %c0_29 = arith.constant 0 : index
    %48 = vector.load %arg4[%c7, %c0_28, %c0_29] : memref<9x128x128xbf16, #tpu.memory_space<vmem>>, vector<1x128x128xbf16>
    %49 = vector.shape_cast %48 : vector<1x128x128xbf16> to vector<128x128xbf16>
    %cst_30 = arith.constant dense<0.000000e+00> : vector<256x128xf32>
    %50 = tpu.matmul %47, %49, %cst_30 {dimension_numbers = #tpu.dot_dimension_numbers<[1], [0], [0], [1], [0, 0, 1, 1], [], []>} : vector<256x128xbf16>, vector<128x128xbf16>, vector<256x128xf32> -> vector<256x128xf32>
    %51 = arith.addf %46, %50 : vector<256x128xf32>
    %52 = vector.extract_strided_slice %13 {offsets = [0, 1, 0], sizes = [18, 15, 128], strides = [1, 1, 1]} : vector<18x16x128xbf16> to vector<18x15x128xbf16>
    %53 = tpu.concatenate %52, %14 in 1 : vector<18x15x128xbf16>, vector<18x1x128xbf16> -> vector<18x16x128xbf16>
    %54 = vector.shape_cast %53 : vector<18x16x128xbf16> to vector<288x128xbf16>
    %55 = vector.extract_strided_slice %54 {offsets = [0, 0], sizes = [256, 128], strides = [1, 1]} : vector<288x128xbf16> to vector<256x128xbf16>
    %c2 = arith.constant 2 : index
    %c0_31 = arith.constant 0 : index
    %c0_32 = arith.constant 0 : index
    %56 = vector.load %arg4[%c2, %c0_31, %c0_32] : memref<9x128x128xbf16, #tpu.memory_space<vmem>>, vector<1x128x128xbf16>
    %57 = vector.shape_cast %56 : vector<1x128x128xbf16> to vector<128x128xbf16>
    %cst_33 = arith.constant dense<0.000000e+00> : vector<256x128xf32>
    %58 = tpu.matmul %55, %57, %cst_33 {dimension_numbers = #tpu.dot_dimension_numbers<[1], [0], [0], [1], [0, 0, 1, 1], [], []>} : vector<256x128xbf16>, vector<128x128xbf16>, vector<256x128xf32> -> vector<256x128xf32>
    %59 = arith.addf %51, %58 : vector<256x128xf32>
    %60 = vector.extract_strided_slice %54 {offsets = [16, 0], sizes = [256, 128], strides = [1, 1]} : vector<288x128xbf16> to vector<256x128xbf16>
    %c5 = arith.constant 5 : index
    %c0_34 = arith.constant 0 : index
    %c0_35 = arith.constant 0 : index
    %61 = vector.load %arg4[%c5, %c0_34, %c0_35] : memref<9x128x128xbf16, #tpu.memory_space<vmem>>, vector<1x128x128xbf16>
    %62 = vector.shape_cast %61 : vector<1x128x128xbf16> to vector<128x128xbf16>
    %cst_36 = arith.constant dense<0.000000e+00> : vector<256x128xf32>
    %63 = tpu.matmul %60, %62, %cst_36 {dimension_numbers = #tpu.dot_dimension_numbers<[1], [0], [0], [1], [0, 0, 1, 1], [], []>} : vector<256x128xbf16>, vector<128x128xbf16>, vector<256x128xf32> -> vector<256x128xf32>
    %64 = arith.addf %59, %63 : vector<256x128xf32>
    %65 = vector.extract_strided_slice %54 {offsets = [32, 0], sizes = [256, 128], strides = [1, 1]} : vector<288x128xbf16> to vector<256x128xbf16>
    %c8 = arith.constant 8 : index
    %c0_37 = arith.constant 0 : index
    %c0_38 = arith.constant 0 : index
    %66 = vector.load %arg4[%c8, %c0_37, %c0_38] : memref<9x128x128xbf16, #tpu.memory_space<vmem>>, vector<1x128x128xbf16>
    %67 = vector.shape_cast %66 : vector<1x128x128xbf16> to vector<128x128xbf16>
    %cst_39 = arith.constant dense<0.000000e+00> : vector<256x128xf32>
    %68 = tpu.matmul %65, %67, %cst_39 {dimension_numbers = #tpu.dot_dimension_numbers<[1], [0], [0], [1], [0, 0, 1, 1], [], []>} : vector<256x128xbf16>, vector<128x128xbf16>, vector<256x128xf32> -> vector<256x128xf32>
    %69 = arith.addf %64, %68 : vector<256x128xf32>
    %cst_40 = arith.constant 0.000000e+00 : f32
    %70 = vector.broadcast %cst_40 : f32 to vector<256x128xf32>
    %71 = arith.maximumf %69, %70 : vector<256x128xf32>
    %72 = arith.truncf %71 : vector<256x128xf32> to vector<256x128xbf16>
    %c0_41 = arith.constant 0 : index
    %c0_42 = arith.constant 0 : index
    %73 = vector.load %arg5[%c0_41, %c0_42] : memref<128x128xbf16, #tpu.memory_space<vmem>>, vector<128x128xbf16>
    %cst_43 = arith.constant dense<0.000000e+00> : vector<256x128xf32>
    %74 = tpu.matmul %72, %73, %cst_43 {dimension_numbers = #tpu.dot_dimension_numbers<[1], [0], [0], [1], [0, 0, 1, 1], [], []>} : vector<256x128xbf16>, vector<128x128xbf16>, vector<256x128xf32> -> vector<256x128xf32>
    %c0_44 = arith.constant 0 : index
    %c0_45 = arith.constant 0 : index
    %75 = vector.load %arg8[%c0_44, %c0_45] : memref<1x128xf32, #tpu.memory_space<vmem>>, vector<1x128xf32>
    %76 = vector.broadcast %75 : vector<1x128xf32> to vector<256x128xf32>
    %77 = arith.addf %74, %76 : vector<256x128xf32>
    %78 = vector.shape_cast %1 : vector<16x16x128xbf16> to vector<256x128xbf16>
    %79 = arith.extf %78 : vector<256x128xbf16> to vector<256x128xf32>
    %80 = arith.addf %77, %79 : vector<256x128xf32>
    %cst_46 = arith.constant 0.000000e+00 : f32
    %81 = vector.broadcast %cst_46 : f32 to vector<256x128xf32>
    %82 = arith.maximumf %80, %81 : vector<256x128xf32>
    %83 = vector.shape_cast %82 : vector<256x128xf32> to vector<1x16x16x128xf32>
    %c0_47 = arith.constant 0 : index
    %c0_48 = arith.constant 0 : index
    %c0_49 = arith.constant 0 : index
    %c0_50 = arith.constant 0 : index
    %84 = vector.load %arg9[%c0_47, %c0_48, %c0_49, %c0_50] : memref<1x16x16x128xf32, #tpu.memory_space<vmem>>, vector<1x16x16x128xf32>
    tpu.vector_store %arg9[%c0_47, %c0_48, %c0_49, %c0_50], %83 {strides = array<i32>} : memref<1x16x16x128xf32, #tpu.memory_space<vmem>>, vector<1x16x16x128xf32>,
    return
  }
  func.func @transform_0(%arg0: i32, %arg1: i32) -> (i32, i32, i32, i32) {
    %c0_i32 = arith.constant 0 : i32
    %c0_i32_0 = arith.constant 0 : i32
    %c0_i32_1 = arith.constant 0 : i32
    return %arg0, %arg1, %c0_i32, %c0_i32_0 : i32, i32, i32, i32
  }
  func.func @transform_1(%arg0: i32, %arg1: i32) -> (i32, i32) {
    %c0_i32 = arith.constant 0 : i32
    %c0_i32_0 = arith.constant 0 : i32
    %c0_i32_1 = arith.constant 0 : i32
    return %c0_i32, %c0_i32_0 : i32, i32
  }
  func.func @transform_2(%arg0: i32, %arg1: i32) -> (i32, i32, i32) {
    %c0_i32 = arith.constant 0 : i32
    %c0_i32_0 = arith.constant 0 : i32
    %c0_i32_1 = arith.constant 0 : i32
    %c0_i32_2 = arith.constant 0 : i32
    return %c0_i32, %c0_i32_0, %c0_i32_1 : i32, i32, i32
  }
  func.func @transform_3(%arg0: i32, %arg1: i32) -> (i32, i32) {
    %c0_i32 = arith.constant 0 : i32
    %c0_i32_0 = arith.constant 0 : i32
    %c0_i32_1 = arith.constant 0 : i32
    return %c0_i32, %c0_i32_0 : i32, i32
  }
  func.func @transform_4(%arg0: i32, %arg1: i32) -> (i32, i32) {
    %c0_i32 = arith.constant 0 : i32
    %c0_i32_0 = arith.constant 0 : i32
    %c0_i32_1 = arith.constant 0 : i32
    return %c0_i32, %c0_i32_0 : i32, i32
  }
  func.func @transform_5(%arg0: i32, %arg1: i32) -> (i32, i32) {
    %c0_i32 = arith.constant 0 : i32
    %c0_i32_0 = arith.constant 0 : i32
    %c0_i32_1 = arith.constant 0 : i32
    return %c0_i32, %c0_i32_0 : i32, i32
  }
  func.func @transform_6(%arg0: i32, %arg1: i32) -> (i32, i32) {
    %c0_i32 = arith.constant 0 : i32
    %c0_i32_0 = arith.constant 0 : i32
    %c0_i32_1 = arith.constant 0 : i32
    return %c0_i32, %c0_i32_0 : i32, i32
  }
  func.func @transform_7(%arg0: i32, %arg1: i32) -> (i32, i32, i32, i32) {
    %c0_i32 = arith.constant 0 : i32
    %c0_i32_0 = arith.constant 0 : i32
    %c0_i32_1 = arith.constant 0 : i32
    return %arg0, %arg1, %c0_i32, %c0_i32_0 : i32, i32, i32, i32
  }
}

</mosaic_0001>

<bundles_post_ra>
// kernel: bottleneck_forward.1
= control target key start
LH: loop header
LB: loop body
LE: loop exit
PB: predicated region body
PF: predicated region fallthrough
CT: control target
= control target key end

     0   :  { %s5073_s24 = smov 0   ;;  %s5075_s25 = smov 0   ;;  %s6593_s0 = inlined_call_operand.vmem [shape: bf16[2,16,16,128], index: 0, kind: input, shape index: {}]   ;;  %s6594_s1 = inlined_call_operand.vmem [shape: bf16[128,128], index: 1, kind: input, shape index: {}]   ;;  %s6595_s2 = inlined_call_operand.vmem [shape: bf16[9,128,128], index: 2, kind: input, shape index: {}]   ;;  %s6596_s3 = inlined_call_operand.vmem [shape: bf16[128,128], index: 3, kind: input, shape index: {}]   ;;  %s6597_s4 = inlined_call_operand.vmem [shape: f32[1,128], index: 4, kind: input, shape index: {}]   ;;  %s6598_s5 = inlined_call_operand.vmem [shape: f32[1,128], index: 5, kind: input, shape index: {}]   ;;  %s6599_s6 = inlined_call_operand.vmem [shape: f32[1,128], index: 6, kind: input, shape index: {}]   ;;  %s6600_s7 = inlined_call_operand.vmem [shape: f32[2,16,16,128], index: 7, kind: output, shape index: {}]  }
   0x1   :  { %s5077_s26 = smov 0  }
   0x2 LB: > { %s29_s27 = sadd.s32 1, %s5026_s25  ;;  %p3795_p0 = scmp.ge.s32.totalorder %s5030_s26, 1  ;;  %s5030_s26 = sphi %s5077_s26, %s17_s26   ;;  %s5026_s25 = sphi %s5075_s25, %s6669_s25   ;;  %s5022_s24 = sphi %s5073_s24, %s6668_s24  }
   0x3   : > { %p31_p1 = scmp.ge.s32.totalorder %s29_s27, 2  ;;  %p259_p2 = scmp.lt.s32.totalorder %s5030_s26, 3 }
   0x5   : > { %s6671_s27 = smov (%p31_p1, %s29_s27), 0  ;;  %p260_p3 = pnand %p3795_p0, %p259_p2 }
   0x7   : > { %263 = sbr.rel (%p260_p3) target bundleno = 981 (0x3d5), region = 48 }
   0xc   : > { %v4872_v0 = vld [vmem:[%s6594_s1 + $0x38] sm:$0xff]   ;;  %p302_p4 = scmp.lt.s32.totalorder %s5022_s24, 1  ;;  %v4873_v1 = vld [vmem:[%s6594_s1 + $0x30] sm:$0xff]   ;;  %v4874_v2 = vld [vmem:[%s6594_s1 + $0x28] sm:$0xff]   ;;  %vm875_vm0 = vcmask 1040384   ;;  %v6601_v40 = vmov 0  }
   0xd   : > { %4303 = vmatprep.subr.bf16.mxu0 %v4872_v0  ;;  %4831 = vmatprep.subr.bf16.mxu1 %v4872_v0  ;;  %v4875_v3 = vld [vmem:[%s6594_s1 + $0x20] sm:$0xff]   ;;  %v4876_v6 = vld [vmem:[%s6594_s1 + $0x18] sm:$0xff]   ;;  %v4877_v7 = vld [vmem:[%s6594_s1 + $0x10] sm:$0xff]   ;;  %vm876_vm1 = vsmask.f32 256  ;;  %v742_v41 = vrot.slane %v6601_v40, 7 }
   0xe   : > { %s6673_s24 = smov (!%p302_p4, %s5022_s24), 1  ;;  %4304 = vmatpush3.bf16.msra.mxu0 %v4872_v0  ;;  %4839 = vmatpush3.bf16.msra.mxu1 %v4872_v0  ;;  %v4878_v8 = vld [vmem:[%s6594_s1 + $0x8] sm:$0xff]   ;;  %v4879_v9 = vld [vmem:[%s6594_s1] sm:$0xff]   ;;  %v4897_v13 = vld [vmem:[%s6595_s2 + $0xf8] sm:$0xff]   ;;  %vm2493_vm3 = vcmask 1047552  }
   0xf   : > { %4305 = vmatprep.subr.bf16.mxu0 %v4873_v1  ;;  %4832 = vmatprep.subr.bf16.mxu1 %v4873_v1  ;;  %s4037_s11 = sshll.u32 %s6673_s24, 7  ;;  %v4896_v15 = vld [vmem:[%s6595_s2 + $0x38] sm:$0xff]   ;;  %v4898_v16 = vld [vmem:[%s6595_s2 + $0x30] sm:$0xff]   ;;  %v4900_v22 = vld [vmem:[%s6595_s2 + $0x28] sm:$0xff]   ;;  %vm2494_vm4 = vsmask.f32 7424 }
  0x10   : > { %s5106_s14 = scalar_lea.vmem %s6593_s0, %s4037_s11  ;;  %v4899_v17 = vld [vmem:[%s6595_s2 + $0xf0] sm:$0xff]   ;;  %v4901_v23 = vld [vmem:[%s6595_s2 + $0xe8] sm:$0xff]   ;;  %v4902_v24 = vld [vmem:[%s6595_s2 + $0x20] sm:$0xff]   ;;  %s4038_s10 = sshll.u32 %s6673_s24, 8 }
  0x11   : > { %v324_v4 = vld [vmem:[%s5106_s14] sm:$0xff]   ;;  %v326_v10 = vld [vmem:[%s5106_s14 + $0x8] sm:$0xff]   ;;  %v328_v11 = vld [vmem:[%s5106_s14 + $0x10] sm:$0xff]   ;;  %s6506_s13 = scalar_lea.vmem %s6600_s7, %s4038_s10 }
  0x12   : > { %4306 = vmatpush3.bf16.msra.mxu0 %v4873_v1  ;;  %4840 = vmatpush3.bf16.msra.mxu1 %v4873_v1  ;;  %v340_v5 = vld [vmem:[%s5106_s14 + $0x40] sm:$0xff]   ;;  %v342_v12 = vld [vmem:[%s5106_s14 + $0x48] sm:$0xff]   ;;  %v344_v14 = vld [vmem:[%s5106_s14 + $0x50] sm:$0xff]  }
  0x13   : > { %4307 = vmatprep.subr.bf16.mxu0 %v4874_v2  ;;  %4833 = vmatprep.subr.bf16.mxu1 %v4874_v2  ;;  %v330_v18 = vld [vmem:[%s5106_s14 + $0x18] sm:$0xff]   ;;  %v332_v19 = vld [vmem:[%s5106_s14 + $0x20] sm:$0xff]   ;;  %v334_v25 = vld [vmem:[%s5106_s14 + $0x28] sm:$0xff]  }
  0x14   : > { %4319 = vmatprep.mubr.bf16.mxu0 %v324_v4  ;;  %4335 = vmatprep.mubr.bf16.mxu1 %v340_v5  ;;  %v346_v20 = vld [vmem:[%s5106_s14 + $0x58] sm:$0xff]   ;;  %v348_v21 = vld [vmem:[%s5106_s14 + $0x60] sm:$0xff]   ;;  %v336_v26 = vld [vmem:[%s5106_s14 + $0x30] sm:$0xff]  }
  0x15   : > { %v350_v27 = vld [vmem:[%s5106_s14 + $0x68] sm:$0xff]   ;;  %v352_v28 = vld [vmem:[%s5106_s14 + $0x70] sm:$0xff]   ;;  %v338_v29 = vld [vmem:[%s5106_s14 + $0x38] sm:$0xff]  }
  0x16   : > { %4308 = vmatpush3.bf16.msra.mxu0 %v4874_v2  ;;  %4841 = vmatpush3.bf16.msra.mxu1 %v4874_v2  ;;  %v354_v30 = vld [vmem:[%s5106_s14 + $0x78] sm:$0xff]   ;;  %v4903_v31 = vld [vmem:[%s6595_s2 + $0xe0] sm:$0xff]   ;;  %v4906_v34 = vld [vmem:[%s6595_s2 + $0x10] sm:$0xff]  }
  0x17   : > { %4309 = vmatprep.subr.bf16.mxu0 %v4875_v3  ;;  %4834 = vmatprep.subr.bf16.mxu1 %v4875_v3  ;;  %v4904_v32 = vld [vmem:[%s6595_s2 + $0x18] sm:$0xff]   ;;  %v4907_v35 = vld [vmem:[%s6595_s2 + $0xd0] sm:$0xff]   ;;  %v4908_v36 = vld [vmem:[%s6595_s2 + $0x8] sm:$0xff]  }
  0x18   : > { %v4905_v33 = vld [vmem:[%s6595_s2 + $0xd8] sm:$0xff]   ;;  %v4909_v37 = vld [vmem:[%s6595_s2 + $0xc8] sm:$0xff]   ;;  %v4910_v38 = vld [vmem:[%s6595_s2] sm:$0xff]  }
  0x19   : > { %v4911_v39 = vld [vmem:[%s6595_s2 + $0xc0] sm:$0xff]   ;;  %vm5188_vm2 = vmand %vm875_vm0, %vm876_vm1  ;;  %v5200_v44 = vld [vmem:[%s6595_s2 + $0x1b8] sm:$0xff]  }
  0x1a   : > { %4310 = vmatpush3.bf16.msra.mxu0 %v4875_v3  ;;  %4842 = vmatpush3.bf16.msra.mxu1 %v4875_v3  ;;  %v5194_v43 = vsel %vm5188_vm2, 0, %v742_v41  ;;  %v5206_v45 = vld [vmem:[%s6595_s2 + $0x78] sm:$0xff]   ;;  %v5212_v47 = vld [vmem:[%s6597_s4] ss:$0 sm:$0xff]  ;;  %vm5572_vm5 = vmand %vm2493_vm3, %vm2494_vm4 }
  0x1b   : > { %4311 = vmatprep.subr.bf16.mxu0 %v4876_v6  ;;  %4835 = vmatprep.subr.bf16.mxu1 %v4876_v6  ;;  %v4930_v42 = vld [vmem:[%s6595_s2 + $0x128] sm:$0xff]  }
  0x1e   : > { %4312 = vmatpush3.bf16.msra.mxu0 %v4876_v6  ;;  %4843 = vmatpush3.bf16.msra.mxu1 %v4876_v6 }
  0x1f   : > { %4313 = vmatprep.subr.bf16.mxu0 %v4877_v7  ;;  %4836 = vmatprep.subr.bf16.mxu1 %v4877_v7 }
  0x22   : > { %4314 = vmatpush3.bf16.msra.mxu0 %v4877_v7  ;;  %4844 = vmatpush3.bf16.msra.mxu1 %v4877_v7 }
  0x23   : > { %4315 = vmatprep.subr.bf16.mxu0 %v4878_v8  ;;  %4837 = vmatprep.subr.bf16.mxu1 %v4878_v8 }
  0x26   : > { %4316 = vmatpush3.bf16.msra.mxu0 %v4878_v8  ;;  %4845 = vmatpush3.bf16.msra.mxu1 %v4878_v8 }
  0x27   : > { %4317 = vmatprep.subr.bf16.mxu0 %v4879_v9  ;;  %4838 = vmatprep.subr.bf16.mxu1 %v4879_v9 }
  0x2a   : > { %4318 = vmatpush3.bf16.msra.mxu0 %v4879_v9  ;;  %4846 = vmatpush3.bf16.msra.mxu1 %v4879_v9 }
  0x2b   : > { %4399 = vmatprep.subr.bf16.mxu0 %v4897_v13  ;;  %4351 = vmatprep.subr.bf16.mxu1 %v4896_v15 }
  0x2d   : > { %4320 = vmatmul.mubr.bf16.vlgmr.msra.gmra.mxu0 %v326_v10  ;;  %4336 = vmatmul.mubr.bf16.vlgmr.msra.gmra.mxu1 %v342_v12 }
  0x2e   : > { %4323 = vmatprep.mubr.bf16.mxu0 %v328_v11  ;;  %4339 = vmatprep.mubr.bf16.mxu1 %v344_v14 }
  0x2f   : > { %4352 = vmatpush3.bf16.msra.mxu1 %v4896_v15  ;;  %4400 = vmatpush3.bf16.msra.mxu0 %v4897_v13 }
  0x30   : > { %4353 = vmatprep.subr.bf16.mxu1 %v4898_v16  ;;  %4401 = vmatprep.subr.bf16.mxu0 %v4899_v17 }
  0x33   : > { %4354 = vmatpush3.bf16.msra.mxu1 %v4898_v16  ;;  %4402 = vmatpush3.bf16.msra.mxu0 %v4899_v17 }
  0x34   : > { %4355 = vmatprep.subr.bf16.mxu1 %v4900_v22  ;;  %4403 = vmatprep.subr.bf16.mxu0 %v4901_v23 }
  0x35   : > { %4324 = vmatmul.mubr.bf16.gmra.mxu0 %v330_v18  ;;  %4340 = vmatmul.mubr.bf16.gmra.mxu1 %v346_v20 }
  0x36   : > { %4327 = vmatprep.mubr.bf16.mxu0 %v332_v19  ;;  %4343 = vmatprep.mubr.bf16.mxu1 %v348_v21 }
  0x37   : > { %4356 = vmatpush3.bf16.msra.mxu1 %v4900_v22  ;;  %4404 = vmatpush3.bf16.msra.mxu0 %v4901_v23 }
  0x38   : > { %4357 = vmatprep.subr.bf16.mxu1 %v4902_v24  ;;  %4405 = vmatprep.subr.bf16.mxu0 %v4903_v31 }
  0x3b   : > { %4358 = vmatpush3.bf16.msra.mxu1 %v4902_v24  ;;  %4406 = vmatpush3.bf16.msra.mxu0 %v4903_v31 }
  0x3c   : > { %4359 = vmatprep.subr.bf16.mxu1 %v4904_v32  ;;  %4407 = vmatprep.subr.bf16.mxu0 %v4905_v33 }
  0x3d   : > { %4328 = vmatmul.mubr.bf16.gmra.mxu0 %v334_v25  ;;  %4344 = vmatmul.mubr.bf16.gmra.mxu1 %v350_v27 }
  0x3e   : > { %4331 = vmatprep.mubr.bf16.mxu0 %v336_v26  ;;  %4347 = vmatprep.mubr.bf16.mxu1 %v352_v28 }
  0x3f   : > { %4360 = vmatpush3.bf16.msra.mxu1 %v4904_v32  ;;  %4408 = vmatpush3.bf16.msra.mxu0 %v4905_v33 }
  0x40   : > { %4361 = vmatprep.subr.bf16.mxu1 %v4906_v34  ;;  %4409 = vmatprep.subr.bf16.mxu0 %v4907_v35 }
  0x43   : > { %4362 = vmatpush3.bf16.msra.mxu1 %v4906_v34  ;;  %4410 = vmatpush3.bf16.msra.mxu0 %v4907_v35 }
  0x44   : > { %4363 = vmatprep.subr.bf16.mxu1 %v4908_v36  ;;  %4411 = vmatprep.subr.bf16.mxu0 %v4909_v37 }
  0x45   : > { %4332 = vmatmul.mubr.bf16.gmra.mxu0 %v338_v29  ;;  %4348 = vmatmul.mubr.bf16.gmra.mxu1 %v354_v30 }
  0x46   : > { %4367 = vmatprep.mubr.bf16.mxu1 %v5194_v43 }
  0x47   : > { %4364 = vmatpush3.bf16.msra.mxu1 %v4908_v36  ;;  %4412 = vmatpush3.bf16.msra.mxu0 %v4909_v37  ;;  %v4913_v36 = vld [vmem:[%s6595_s2 + $0x1b0] sm:$0xff]  }
  0x48   : > { %4365 = vmatprep.subr.bf16.mxu1 %v4910_v38  ;;  %4413 = vmatprep.subr.bf16.mxu0 %v4911_v39 }
  0x4b   : > { %4366 = vmatpush3.bf16.msra.mxu1 %v4910_v38  ;;  %4414 = vmatpush3.bf16.msra.mxu0 %v4911_v39 }
  0x4c   : > { %4447 = vmatprep.subr.bf16.mxu1 %v5200_v44  ;;  %4495 = vmatprep.subr.bf16.mxu0 %v5206_v45 }
  0xed   : > { %v4321_v46 = vpop.f32.mrf.mxu0  ;;  %v4337_v48 = vpop.f32.mrf.mxu1 }
  0xee   : > { %v566_v50 = vadd.f32 %v4321_v46, %v5212_v47  ;;  %v5235_v18 = vadd.f32 %v4337_v48, %v5212_v47 }
  0xef   : > { %v557_v49 = vpop.f32.mrf.mxu0  ;;  %v621_v51 = vpop.f32.mrf.mxu1 }
  0xf0   : > { %v558_v53 = vadd.f32 %v5212_v47, %v557_v49  ;;  %v686_v57 = vmax.f32 %v566_v50, 0.0  ;;  %v622_v8 = vadd.f32 %v5212_v47, %v621_v51  ;;  %v702_v39 = vmax.f32 %v5235_v18, 0.0 }
  0xf1   : > { %v4322_v52 = vpop.f32.mrf.mxu0  ;;  %v4338_v55 = vpop.f32.mrf.mxu1 }
  0xf2   : > { %v569_v54 = vadd.f32 %v4322_v52, %v5212_v47  ;;  %v684_v62 = vmax.f32 %v558_v53, 0.0  ;;  %v700_v26 = vmax.f32 %v622_v8, 0.0  ;;  %v633_v27 = vadd.f32 %v4338_v55, %v5212_v47  ;;  %v4918_v52 = vld [vmem:[%s6595_s2 + $0x70] sm:$0xff]  }
  0xf3   : > { %v560_v56 = vpop.f32.mrf.mxu0  ;;  %v624_v60 = vpop.f32.mrf.mxu1 }
  0xf4   : > { %v687_v58 = vmax.f32 %v569_v54, 0.0  ;;  %v561_v59 = vadd.f32 %v5212_v47, %v560_v56  ;;  %v625_v9 = vadd.f32 %v5212_v47, %v624_v60  ;;  %v703_v49 = vmax.f32 %v633_v27, 0.0 }
  0xf5   : > { %v4325_v61 = vpop.f32.mrf.mxu0  ;;  %v4341_v1 = vpop.f32.mrf.mxu1 }
  0xf6   : > { %v5218_v63 = vpack.c.bf16 %v687_v58, %v686_v57  ;;  %v685_v0 = vmax.f32 %v561_v59, 0.0  ;;  %v582_v2 = vadd.f32 %v4325_v61, %v5212_v47  ;;  %v701_v28 = vmax.f32 %v625_v9, 0.0 }
  0xf7   : > { %v573_v3 = vpop.f32.mrf.mxu0  ;;  %v637_v6 = vpop.f32.mrf.mxu1  ;;  %v5277_v56 = vadd.f32 %v4341_v1, %v5212_v47 }
  0xf8   : > { %v5221_v4 = vpack.c.bf16 %v685_v0, %v684_v62  ;;  %v754_v5 = vshrl.u32 %v5218_v63, 16  ;;  %v574_v10 = vadd.f32 %v5212_v47, %v573_v3  ;;  %v690_v14 = vmax.f32 %v582_v2, 0.0  ;;  %v4914_v62 = vld [vmem:[%s6595_s2 + $0x1a8] sm:$0xff]  }
  0xf9   : > { %v4326_v7 = vpop.f32.mrf.mxu0  ;;  %v5229_v13 = vpop.f32.mrf.mxu1  ;;  %v757_v17 = vshll.u32 %v5218_v63, 16  ;;  %v5266_v51 = vpack.c.bf16 %v701_v28, %v700_v26 }
  0xfa   : > { %v585_v11 = vadd.f32 %v4326_v7, %v5212_v47  ;;  %v747_v12 = vshrl.u32 %v5221_v4, 16  ;;  %v756_v16 = vrot.slane %v754_v5, 7  ;;  %v750_v22 = vshll.u32 %v5221_v4, 16 }
  0xfb   : > { %v576_v15 = vpop.f32.mrf.mxu0  ;;  %v640_v23 = vpop.f32.mrf.mxu1  ;;  %v688_v29 = vmax.f32 %v574_v10, 0.0  ;;  %v803_v10 = vshrl.u32 %v5266_v51, 16  ;;  %v5322_v27 = vadd.f32 %v5229_v13, %v5212_v47  ;;  %v806_v28 = vshll.u32 %v5266_v51, 16 }
  0xfc   : > { %v691_v19 = vmax.f32 %v585_v11, 0.0  ;;  %v577_v20 = vadd.f32 %v5212_v47, %v576_v15  ;;  %v749_v21 = vrot.slane %v747_v12, 7  ;;  %v759_v25 = vor.u32 %v757_v17, %v756_v16 }
  0xfd   : > { %v4329_v24 = vpop.f32.mrf.mxu0  ;;  %v5248_v33 = vpop.f32.mrf.mxu1  ;;  %v5299_v9 = vadd.f32 %v5212_v47, %v640_v23 }
  0xfe   : > { %v5244_v30 = vpack.c.bf16 %v691_v19, %v690_v14  ;;  %v689_v31 = vmax.f32 %v577_v20, 0.0  ;;  %v752_v32 = vor.u32 %v750_v22, %v749_v21  ;;  %v598_v34 = vadd.f32 %v4329_v24, %v5212_v47  ;;  %v4915_v24 = vld [vmem:[%s6595_s2 + $0x1a0] sm:$0xff]  }
  0xff   : > { %v589_v35 = vpop.f32.mrf.mxu0  ;;  %v5259_v41 = vpop.f32.mrf.mxu1  ;;  %v5263_v48 = vsel %vm5188_vm2, 0, %v759_v25  ;;  %v5307_v20 = vpack.c.bf16 %v703_v49, %v702_v39  ;;  %v706_v21 = vmax.f32 %v5277_v56, 0.0  ;;  %v5346_v49 = vadd.f32 %v5248_v33, %v5212_v47  ;;  %v4916_v33 = vld [vmem:[%s6595_s2 + $0x198] sm:$0xff]  }
 0x100   : > { %v5254_v37 = vpack.c.bf16 %v689_v31, %v688_v29  ;;  %v879_v38 = vsel %vm5188_vm2, 0, %v752_v32  ;;  %v768_v50 = vshrl.u32 %v5244_v30, 16  ;;  %v590_v53 = vadd.f32 %v5212_v47, %v589_v35  ;;  %v4920_v31 = vld [vmem:[%s6595_s2 + $0x68] sm:$0xff]  }
 0x101   : > { %v4330_v46 = vpop.f32.mrf.mxu0  ;;  %4368 = vmatmul.mubr.bf16.vlgmr.msra.gmra.mxu1 %v879_v38  ;;  %4415 = vmatprep.mubr.bf16.mxu0 %v879_v38  ;;  %v5279_v57 = vpop.f32.mrf.mxu1  ;;  %v694_v58 = vmax.f32 %v598_v34, 0.0  ;;  %v771_v61 = vshll.u32 %v5244_v30, 16  ;;  %v705_v35 = vmax.f32 %v5299_v9, 0.0  ;;  %v6603_v9 = vshrl.u32 %v5307_v20, 16 }
 0x102   : > { %v601_v54 = vadd.f32 %v4330_v46, %v5212_v47  ;;  %4448 = vmatpush3.bf16.msra.mxu1 %v5200_v44  ;;  %4371 = vmatprep.mubr.bf16.mxu1 %v5263_v48  ;;  %v761_v55 = vshrl.u32 %v5254_v37, 16  ;;  %v770_v60 = vrot.slane %v768_v50, 7  ;;  %v5286_v44 = vadd.f32 %v5212_v47, %v637_v6 }
 0x103   : > { %4416 = vmatmul.mubr.bf16.vlgmr.msra.gmra.mxu0 %v5263_v48  ;;  %v592_v59 = vpop.f32.mrf.mxu0  ;;  %4449 = vmatprep.subr.bf16.mxu1 %v4913_v36  ;;  %v764_v3 = vshll.u32 %v5254_v37, 16  ;;  %v656_v7 = vpop.f32.mrf.mxu1  ;;  %v692_v11 = vmax.f32 %v590_v53, 0.0 }
 0x104   : > { %v695_v0 = vmax.f32 %v601_v54, 0.0  ;;  %v593_v1 = vadd.f32 %v5212_v47, %v592_v59  ;;  %v763_v2 = vrot.slane %v761_v55, 7  ;;  %4496 = vmatpush3.bf16.msra.mxu0 %v5206_v45  ;;  %v773_v6 = vor.u32 %v771_v61, %v770_v60 }
 0x105   : > { %v4333_v8 = vpop.f32.mrf.mxu0  ;;  %4497 = vmatprep.subr.bf16.mxu0 %v4918_v52  ;;  %v4349_v18 = vpop.f32.mrf.mxu1  ;;  %v704_v23 = vmax.f32 %v5286_v44, 0.0  ;;  %v5357_v60 = vadd.f32 %v5212_v47, %v5259_v41  ;;  %v665_v41 = vadd.f32 %v5279_v57, %v5212_v47  ;;  %v710_v57 = vmax.f32 %v5346_v49, 0.0 }
 0x106   : > { %v5302_v14 = vpack.c.bf16 %v695_v0, %v694_v58  ;;  %v693_v15 = vmax.f32 %v593_v1, 0.0  ;;  %v766_v16 = vor.u32 %v764_v3, %v763_v2  ;;  %4450 = vmatpush3.bf16.msra.mxu1 %v4913_v36  ;;  %v614_v45 = vadd.f32 %v4333_v8, %v5212_v47 }
 0x107   : > { %v605_v19 = vpop.f32.mrf.mxu0  ;;  %4451 = vmatprep.subr.bf16.mxu1 %v4914_v62  ;;  %v5325_v29 = vpop.f32.mrf.mxu1  ;;  %v5334_v34 = vsel %vm5188_vm2, 0, %v773_v6  ;;  %v805_v36 = vrot.slane %v803_v10, 7  ;;  %v657_v6 = vadd.f32 %v5212_v47, %v656_v7  ;;  %v678_v7 = vadd.f32 %v4349_v18, %v5212_v47 }
 0x108   : > { %v5314_v25 = vpack.c.bf16 %v693_v15, %v692_v11  ;;  %v5318_v26 = vsel %vm5188_vm2, 0, %v766_v16  ;;  %4498 = vmatpush3.bf16.msra.mxu0 %v4918_v52  ;;  %v782_v13 = vshrl.u32 %v5302_v14, 16  ;;  %v606_v38 = vadd.f32 %v5212_v47, %v605_v19  ;;  %v4921_v52 = vld [vmem:[%s6595_s2 + $0x60] sm:$0xff]  }
 0x109   : > { %v4334_v32 = vpop.f32.mrf.mxu0  ;;  %4372 = vmatmul.mubr.bf16.gmra.mxu1 %v5318_v26  ;;  %4419 = vmatprep.mubr.bf16.mxu0 %v5318_v26  ;;  %v698_v53 = vmax.f32 %v614_v45, 0.0  ;;  %v785_v59 = vshll.u32 %v5302_v14, 16  ;;  %v4350_v2 = vpop.f32.mrf.mxu1  ;;  %v707_v19 = vmax.f32 %v5322_v27, 0.0  ;;  %v808_v49 = vor.u32 %v806_v28, %v805_v36 }
 0x10a   : > { %v617_v39 = vadd.f32 %v4334_v32, %v5212_v47  ;;  %4375 = vmatprep.mubr.bf16.mxu1 %v5334_v34  ;;  %v775_v46 = vshrl.u32 %v5314_v25, 16  ;;  %4452 = vmatpush3.bf16.msra.mxu1 %v4914_v62  ;;  %v784_v58 = vrot.slane %v782_v13, 7  ;;  %v778_v1 = vshll.u32 %v5314_v25, 16 }
 0x10b   : > { %4420 = vmatmul.mubr.bf16.gmra.mxu0 %v5334_v34  ;;  %v608_v54 = vpop.f32.mrf.mxu0  ;;  %4453 = vmatprep.subr.bf16.mxu1 %v4915_v24  ;;  %v696_v11 = vmax.f32 %v606_v38, 0.0  ;;  %v5377_v32 = vpack.c.bf16 %v705_v35, %v704_v23  ;;  %v681_v23 = vadd.f32 %v4350_v2, %v5212_v47  ;;  %v672_v27 = vpop.f32.mrf.mxu1  ;;  %v708_v35 = vmax.f32 %v5357_v60, 0.0 }
 0x10c   : > { %v699_v44 = vmax.f32 %v617_v39, 0.0  ;;  %v609_v62 = vadd.f32 %v5212_v47, %v608_v54  ;;  %v777_v0 = vrot.slane %v775_v46, 7  ;;  %4499 = vmatprep.subr.bf16.mxu0 %v4920_v31  ;;  %v787_v8 = vor.u32 %v785_v59, %v784_v58  ;;  %v4923_v54 = vld [vmem:[%s6595_s2 + $0x58] sm:$0xff]  }
 0x10d   : > { %4500 = vmatpush3.bf16.msra.mxu0 %v4920_v31  ;;  %v4919_v31 = vld [vmem:[%s6595_s2 + $0x190] sm:$0xff]   ;;  %v711_v58 = vmax.f32 %v665_v41, 0.0  ;;  %v670_v60 = vadd.f32 %v5212_v47, %v5325_v29  ;;  %v813_v2 = vshll.u32 %v5307_v20, 16  ;;  %v4922_v41 = vld [vmem:[%s6595_s2 + $0x188] sm:$0xff]   ;;  %v5444_v56 = vsel %vm5188_vm2, 0, %v808_v49 }
 0x10e   : > { %v5372_v15 = vpack.c.bf16 %v699_v44, %v698_v53  ;;  %v697_v16 = vmax.f32 %v609_v62, 0.0  ;;  %v780_v45 = vor.u32 %v778_v1, %v777_v0  ;;  %4454 = vmatpush3.bf16.msra.mxu1 %v4915_v24  ;;  %4501 = vmatprep.subr.bf16.mxu0 %v4921_v52  ;;  %v5396_v18 = vsel %vm5188_vm2, 0, %v787_v8 }
 0x10f   : > { %4455 = vmatprep.subr.bf16.mxu1 %v4916_v33  ;;  %v812_v53 = vrot.slane %v6603_v9, 7  ;;  %v709_v0 = vmax.f32 %v657_v6, 0.0  ;;  %v673_v8 = vadd.f32 %v5212_v47, %v672_v27  ;;  %v817_v47 = vshrl.u32 %v5377_v32, 16 }
 0x110   : > { %v5384_v38 = vpack.c.bf16 %v697_v16, %v696_v11  ;;  %v5388_v39 = vsel %vm5188_vm2, 0, %v780_v45  ;;  %v796_v24 = vshrl.u32 %v5372_v15, 16  ;;  %v799_v36 = vshll.u32 %v5372_v15, 16 }
 0x111   : > { %4376 = vmatmul.mubr.bf16.gmra.mxu1 %v5388_v39  ;;  %4423 = vmatprep.mubr.bf16.mxu0 %v5388_v39  ;;  %v714_v11 = vmax.f32 %v678_v7, 0.0  ;;  %v715_v16 = vmax.f32 %v681_v23, 0.0  ;;  %v815_v45 = vor.u32 %v813_v2, %v812_v53  ;;  %v5429_v27 = vpack.c.bf16 %v707_v19, %v706_v21 }
 0x112   : > { %4379 = vmatprep.mubr.bf16.mxu1 %v5396_v18  ;;  %v789_v44 = vshrl.u32 %v5384_v38, 16  ;;  %v798_v62 = vrot.slane %v796_v24, 7  ;;  %4456 = vmatpush3.bf16.msra.mxu1 %v4916_v33  ;;  %v792_v33 = vshll.u32 %v5384_v38, 16  ;;  %v5431_v9 = vpack.c.bf16 %v711_v58, %v710_v57 }
 0x113   : > { %4424 = vmatmul.mubr.bf16.gmra.mxu0 %v5396_v18  ;;  %4457 = vmatprep.subr.bf16.mxu1 %v4919_v31  ;;  %v712_v7 = vmax.f32 %v670_v60, 0.0  ;;  %v713_v23 = vmax.f32 %v673_v8, 0.0  ;;  %v5446_v21 = vpack.c.bf16 %v715_v16, %v714_v11  ;;  %v819_v57 = vrot.slane %v817_v47, 7 }
 0x114   : > { %v791_v6 = vrot.slane %v789_v44, 7  ;;  %4502 = vmatpush3.bf16.msra.mxu0 %v4921_v52  ;;  %v801_v29 = vor.u32 %v799_v36, %v798_v62  ;;  %v4924_v52 = vld [vmem:[%s6595_s2 + $0x50] sm:$0xff]   ;;  %v5440_v62 = vpack.c.bf16 %v709_v0, %v708_v35  ;;  %v4926_v35 = vld [vmem:[%s6595_s2 + $0x48] sm:$0xff]   ;;  %v2444_v49 = vrot.slane %v750_v22, 1 }
 0x115   : > { %4503 = vmatprep.subr.bf16.mxu0 %v4923_v54  ;;  %v2446_v58 = vrot.slane %v757_v17, 1  ;;  %v2448_v0 = vrot.slane %v764_v3, 1  ;;  %v2450_v60 = vrot.slane %v771_v61, 1  ;;  %v5477_v8 = vpack.c.bf16 %v713_v23, %v712_v7 }
 0x116   : > { %v794_v40 = vor.u32 %v792_v33, %v791_v6  ;;  %4458 = vmatpush3.bf16.msra.mxu1 %v4919_v31  ;;  %v5452_v19 = vsel %vm5188_vm2, 0, %v801_v29  ;;  %v4925_v31 = vld [vmem:[%s6595_s2 + $0x180] sm:$0xff]   ;;  %v820_v22 = vshll.u32 %v5377_v32, 16  ;;  %v5487_v17 = vor.u32 %v2444_v49, %v747_v12 }
 0x117   : > { %4459 = vmatprep.subr.bf16.mxu1 %v4922_v41  ;;  %v2452_v3 = vrot.slane %v778_v1, 1  ;;  %v827_v61 = vshll.u32 %v5429_v27, 16  ;;  %v5495_v6 = vor.u32 %v2446_v58, %v754_v5  ;;  %v5499_v11 = vor.u32 %v2448_v0, %v761_v55  ;;  %v4927_v29 = vld [vmem:[%s6595_s2 + $0x40] sm:$0xff]  }
 0x118   : > { %v5438_v53 = vsel %vm5188_vm2, 0, %v794_v40  ;;  %4504 = vmatpush3.bf16.msra.mxu0 %v4923_v54  ;;  %v5456_v40 = vsel %vm5188_vm2, 0, %v815_v45  ;;  %v824_v54 = vshrl.u32 %v5429_v27, 16  ;;  %v5503_v12 = vor.u32 %v2450_v60, %v768_v50 }
 0x119   : > { %4380 = vmatmul.mubr.bf16.gmra.mxu1 %v5438_v53  ;;  %4427 = vmatprep.mubr.bf16.mxu0 %v5438_v53  ;;  %v822_v16 = vor.u32 %v820_v22, %v819_v57  ;;  %v834_v1 = vshll.u32 %v5440_v62, 16  ;;  %v5511_v5 = vor.u32 %v2452_v3, %v775_v46  ;;  %v2454_v55 = vrot.slane %v785_v59, 1 }
 0x11a   : > { %4383 = vmatprep.mubr.bf16.mxu1 %v5452_v19  ;;  %4460 = vmatpush3.bf16.msra.mxu1 %v4922_v41  ;;  %v5483_v41 = vld [vmem:[%s6595_s2 + $0x138] sm:$0xff]   ;;  %v826_v45 = vrot.slane %v824_v54, 7  ;;  %v831_v50 = vshrl.u32 %v5440_v62, 16  ;;  %v841_v7 = vshll.u32 %v5431_v9, 16  ;;  %v2456_v23 = vrot.slane %v792_v33, 1 }
 0x11b   : > { %4428 = vmatmul.mubr.bf16.gmra.mxu0 %v5452_v19  ;;  %4505 = vmatprep.subr.bf16.mxu0 %v4924_v52  ;;  %v5521_v57 = vor.u32 %v2454_v55, %v782_v13  ;;  %v2458_v46 = vrot.slane %v799_v36, 1  ;;  %v2460_v59 = vrot.slane %v806_v28, 1  ;;  %v2462_v33 = vrot.slane %v813_v2, 1  ;;  %v4933_v36 = vld [vmem:[%s6595_s2 + $0x1f8] sm:$0xff]  }
 0x11c   : > { %4431 = vmatprep.mubr.bf16.mxu0 %v5444_v56  ;;  %4506 = vmatpush3.bf16.msra.mxu0 %v4924_v52  ;;  %v848_v52 = vshll.u32 %v5477_v8, 16  ;;  %v5529_v49 = vor.u32 %v2456_v23, %v789_v44  ;;  %v2466_v58 = vrot.slane %v827_v61, 1  ;;  %v855_v13 = vshll.u32 %v5446_v21, 16 }
 0x11d   : > { %4461 = vmatprep.subr.bf16.mxu1 %v4925_v31  ;;  %4507 = vmatprep.subr.bf16.mxu0 %v4926_v35  ;;  %v5540_v28 = vor.u32 %v2458_v46, %v796_v24  ;;  %v5544_v44 = vor.u32 %v2460_v59, %v803_v10  ;;  %v2468_v2 = vrot.slane %v834_v1, 1  ;;  %v6606_v0 = vshrl.u32 %v5307_v20, 16 }
 0x11e   : > { %4462 = vmatpush3.bf16.msra.mxu1 %v4925_v31  ;;  %v2464_v31 = vrot.slane %v820_v22, 1  ;;  %v5559_v24 = vor.u32 %v2466_v58, %v824_v54  ;;  %v833_v10 = vrot.slane %v831_v50, 7  ;;  %v838_v3 = vshrl.u32 %v5431_v9, 16 }
 0x11f   : > { %4543 = vmatprep.subr.bf16.mxu1 %v5483_v41  ;;  %v5553_v60 = vor.u32 %v2462_v33, %v6606_v0  ;;  %v5563_v55 = vor.u32 %v2468_v2, %v831_v50  ;;  %v2470_v23 = vrot.slane %v841_v7, 1  ;;  %v2472_v46 = vrot.slane %v848_v52, 1 }
 0x120   : > { %4508 = vmatpush3.bf16.msra.mxu0 %v4926_v35  ;;  %v5549_v35 = vsel %vm5188_vm2, 0, %v822_v16  ;;  %v5557_v22 = vor.u32 %v2464_v31, %v817_v47  ;;  %v845_v16 = vshrl.u32 %v5477_v8, 16  ;;  %v829_v47 = vor.u32 %v827_v61, %v826_v45 }
 0x121   : > { %4384 = vmatmul.mubr.bf16.gmra.mxu1 %v5444_v56  ;;  %4509 = vmatprep.subr.bf16.mxu0 %v4927_v29  ;;  %v852_v54 = vshrl.u32 %v5446_v21, 16  ;;  %v5568_v59 = vor.u32 %v2470_v23, %v838_v3  ;;  %v2474_v33 = vrot.slane %v855_v13, 1  ;;  %v836_v50 = vor.u32 %v834_v1, %v833_v10 }
 0x122   : > { %4387 = vmatprep.mubr.bf16.mxu1 %v5456_v40  ;;  %v5570_v31 = vor.u32 %v2472_v46, %v845_v16  ;;  %v840_v61 = vrot.slane %v838_v3, 7  ;;  %v847_v0 = vrot.slane %v845_v16, 7 }
 0x123   : > { %4432 = vmatmul.mubr.bf16.gmra.mxu0 %v5456_v40  ;;  %v2475_v58 = vor.u32 %v2474_v33, %v852_v54  ;;  %v5589_v1 = vsel %vm5188_vm2, 0, %v836_v50  ;;  %v854_v46 = vrot.slane %v852_v54, 7  ;;  %v4929_v54 = vld [vmem:[%s6595_s2 + $0x130] sm:$0xff]   ;;  %v4938_v33 = vld [vmem:[%s6595_s2 + $0x108] sm:$0xff]   ;;  %v4943_v50 = vld [vmem:[%s6595_s2 + $0x1c0] sm:$0xff]  }
 0x124   : > { %4435 = vmatprep.mubr.bf16.mxu0 %v5549_v35  ;;  %4510 = vmatpush3.bf16.msra.mxu0 %v4927_v29  ;;  %v5579_v29 = vsel %vm5188_vm2, 0, %v829_v47  ;;  %v843_v10 = vor.u32 %v841_v7, %v840_v61  ;;  %v850_v23 = vor.u32 %v848_v52, %v847_v0  ;;  %v6609_v52 = vmov 0   ;;  %v4951_v61 = vld [vmem:[%s6595_s2 + $0x90] sm:$0xff]   ;;  %v4957_v0 = vld [vmem:[%s6595_s2 + $0x80] sm:$0xff]  }
 0x125   : > { %4591 = vmatprep.subr.bf16.mxu0 %v4933_v36  ;;  %v5583_v45 = vsel %vm5572_vm5, %v2475_v58, 0  ;;  %v857_v16 = vor.u32 %v855_v13, %v854_v46  ;;  %v4934_v13 = vld [vmem:[%s6595_s2 + $0x1f0] sm:$0xff]   ;;  %v4944_v58 = vld [vmem:[%s6595_s2 + $0xb8] sm:$0xff]  }
 0x126   : > { %v5595_v3 = vsel %vm5188_vm2, 0, %v843_v10  ;;  %v5601_v47 = vsel %vm5188_vm2, 0, %v850_v23  ;;  %v4960_v10 = vld [vmem:[%s6595_s2 + $0x238] sm:$0xff]   ;;  %v5796_v23 = vsel %vm5572_vm5, %v5499_v11, 0 }
 0x127   : > { %v5607_v7 = vsel %vm5188_vm2, 0, %v857_v16 }
 0x129   : > { %4388 = vmatmul.mubr.bf16.gmra.mxu1 %v5549_v35 }
 0x12a   : > { %4391 = vmatprep.mubr.bf16.mxu1 %v5579_v29 }
 0x12b   : > { %4436 = vmatmul.mubr.bf16.gmra.mxu0 %v5579_v29 }
 0x12c   : > { %4439 = vmatprep.mubr.bf16.mxu0 %v5589_v1 }
 0x131   : > { %4392 = vmatmul.mubr.bf16.gmra.mxu1 %v5589_v1 }
 0x132   : > { %4395 = vmatprep.mubr.bf16.mxu1 %v5595_v3 }
 0x133   : > { %4440 = vmatmul.mubr.bf16.gmra.mxu0 %v5595_v3 }
 0x134   : > { %4443 = vmatprep.mubr.bf16.mxu0 %v5601_v47 }
 0x139   : > { %4396 = vmatmul.mubr.bf16.gmra.mxu1 %v5601_v47 }
 0x13a   : > { %4463 = vmatprep.mubr.bf16.mxu1 %v5263_v48  ;;  %v4936_v48 = vld [vmem:[%s6595_s2 + $0x1e8] sm:$0xff]  }
 0x13b   : > { %4444 = vmatmul.mubr.bf16.gmra.mxu0 %v5607_v7 }
 0x13c   : > { %4511 = vmatprep.mubr.bf16.mxu0 %v6609_v52 }
 0x141   : > { %4464 = vmatmul.mubr.bf16.vlgmr.msra.gmra.mxu1 %v5318_v26  ;;  %v4931_v26 = vld [vmem:[%s6595_s2 + $0x120] sm:$0xff]  }
 0x142   : > { %4544 = vmatpush3.bf16.msra.mxu1 %v5483_v41  ;;  %4467 = vmatprep.mubr.bf16.mxu1 %v5334_v34  ;;  %v4937_v34 = vld [vmem:[%s6595_s2 + $0x1e0] sm:$0xff]   ;;  %v4932_v41 = vld [vmem:[%s6595_s2 + $0x118] sm:$0xff]  }
 0x143   : > { %4512 = vmatmul.mubr.bf16.vlgmr.msra.gmra.mxu0 %v5221_v4  ;;  %4545 = vmatprep.subr.bf16.mxu1 %v4929_v54 }
 0x144   : > { %4515 = vmatprep.mubr.bf16.mxu0 %v5218_v63  ;;  %4592 = vmatpush3.bf16.msra.mxu0 %v4933_v36  ;;  %v4940_v36 = vld [vmem:[%s6595_s2 + $0x1d0] sm:$0xff]  }
 0x145   : > { %4593 = vmatprep.subr.bf16.mxu0 %v4934_v13 }
 0x146   : > { %4546 = vmatpush3.bf16.msra.mxu1 %v4929_v54 }
 0x147   : > { %4547 = vmatprep.subr.bf16.mxu1 %v4930_v42 }
 0x148   : > { %4594 = vmatpush3.bf16.msra.mxu0 %v4934_v13  ;;  %v4963_v13 = vld [vmem:[%s6595_s2 + $0x220] sm:$0xff]  }
 0x149   : > { %4468 = vmatmul.mubr.bf16.gmra.mxu1 %v5388_v39  ;;  %4595 = vmatprep.subr.bf16.mxu0 %v4936_v48  ;;  %v4939_v39 = vld [vmem:[%s6595_s2 + $0x1d8] sm:$0xff]  }
 0x14a   : > { %4471 = vmatprep.mubr.bf16.mxu1 %v5396_v18  ;;  %4548 = vmatpush3.bf16.msra.mxu1 %v4930_v42  ;;  %v4935_v18 = vld [vmem:[%s6595_s2 + $0x110] sm:$0xff]  }
 0x14b   : > { %4516 = vmatmul.mubr.bf16.gmra.mxu0 %v5254_v37  ;;  %4549 = vmatprep.subr.bf16.mxu1 %v4931_v26 }
 0x14c   : > { %4519 = vmatprep.mubr.bf16.mxu0 %v5244_v30  ;;  %4596 = vmatpush3.bf16.msra.mxu0 %v4936_v48 }
 0x14d   : > { %4597 = vmatprep.subr.bf16.mxu0 %v4937_v34 }
 0x14e   : > { %4550 = vmatpush3.bf16.msra.mxu1 %v4931_v26 }
 0x14f   : > { %4551 = vmatprep.subr.bf16.mxu1 %v4932_v41 }
 0x150   : > { %4598 = vmatpush3.bf16.msra.mxu0 %v4937_v34 }
 0x151   : > { %4472 = vmatmul.mubr.bf16.gmra.mxu1 %v5438_v53  ;;  %4599 = vmatprep.subr.bf16.mxu0 %v4939_v39  ;;  %v4942_v53 = vld [vmem:[%s6595_s2 + $0x1c8] sm:$0xff]  }
 0x152   : > { %4475 = vmatprep.mubr.bf16.mxu1 %v5452_v19  ;;  %4552 = vmatpush3.bf16.msra.mxu1 %v4932_v41  ;;  %v4941_v19 = vld [vmem:[%s6595_s2 + $0x100] sm:$0xff]   ;;  %v5818_v41 = vsel %vm5572_vm5, %v5503_v12, 0  ;;  %v4964_v12 = vld [vmem:[%s6595_s2 + $0x218] sm:$0xff]  }
 0x153   : > { %4520 = vmatmul.mubr.bf16.gmra.mxu0 %v5314_v25  ;;  %4553 = vmatprep.subr.bf16.mxu1 %v4935_v18 }
 0x154   : > { %4523 = vmatprep.mubr.bf16.mxu0 %v5302_v14  ;;  %4600 = vmatpush3.bf16.msra.mxu0 %v4939_v39 }
 0x155   : > { %4601 = vmatprep.subr.bf16.mxu0 %v4940_v36 }
 0x156   : > { %4554 = vmatpush3.bf16.msra.mxu1 %v4935_v18 }
 0x157   : > { %4555 = vmatprep.subr.bf16.mxu1 %v4938_v33 }
 0x158   : > { %4602 = vmatpush3.bf16.msra.mxu0 %v4940_v36 }
 0x159   : > { %4476 = vmatmul.mubr.bf16.gmra.mxu1 %v5444_v56  ;;  %4603 = vmatprep.subr.bf16.mxu0 %v4942_v53  ;;  %v4949_v56 = vld [vmem:[%s6595_s2 + $0x178] sm:$0xff]  }
 0x15a   : > { %4479 = vmatprep.mubr.bf16.mxu1 %v5456_v40  ;;  %4556 = vmatpush3.bf16.msra.mxu1 %v4938_v33  ;;  %v4945_v40 = vld [vmem:[%s6595_s2 + $0xb0] sm:$0xff]  }
 0x15b   : > { %4524 = vmatmul.mubr.bf16.gmra.mxu0 %v5384_v38  ;;  %4557 = vmatprep.subr.bf16.mxu1 %v4941_v19 }
 0x15c   : > { %4527 = vmatprep.mubr.bf16.mxu0 %v5372_v15  ;;  %4604 = vmatpush3.bf16.msra.mxu0 %v4942_v53  ;;  %v5828_v53 = vsel %vm5572_vm5, %v5511_v5, 0 }
 0x15d   : > { %4605 = vmatprep.subr.bf16.mxu0 %v4943_v50 }
 0x15e   : > { %4558 = vmatpush3.bf16.msra.mxu1 %v4941_v19 }
 0x15f   : > { %4639 = vmatprep.subr.bf16.mxu1 %v4944_v58 }
 0x160   : > { %4606 = vmatpush3.bf16.msra.mxu0 %v4943_v50 }
 0x161   : > { %4480 = vmatmul.mubr.bf16.gmra.mxu1 %v5549_v35  ;;  %4687 = vmatprep.subr.bf16.mxu0 %v4949_v56  ;;  %v4950_v35 = vld [vmem:[%s6595_s2 + $0x170] sm:$0xff]  }
 0x162   : > { %4483 = vmatprep.mubr.bf16.mxu1 %v5579_v29  ;;  %v4948_v29 = vld [vmem:[%s6595_s2 + $0x98] sm:$0xff]  }
 0x163   : > { %4528 = vmatmul.mubr.bf16.gmra.mxu0 %v5266_v51 }
 0x164   : > { %4531 = vmatprep.mubr.bf16.mxu0 %v5307_v20 }
 0x169   : > { %4484 = vmatmul.mubr.bf16.gmra.mxu1 %v5589_v1  ;;  %v4954_v1 = vld [vmem:[%s6595_s2 + $0x88] sm:$0xff]  }
 0x16a   : > { %4487 = vmatprep.mubr.bf16.mxu1 %v5595_v3 }
 0x16b   : > { %4532 = vmatmul.mubr.bf16.gmra.mxu0 %v5377_v32 }
 0x16c   : > { %4535 = vmatprep.mubr.bf16.mxu0 %v5429_v27 }
 0x171   : > { %4488 = vmatmul.mubr.bf16.gmra.mxu1 %v5601_v47 }
 0x172   : > { %4491 = vmatprep.mubr.bf16.mxu1 %v5607_v7 }
 0x173   : > { %4536 = vmatmul.mubr.bf16.gmra.mxu0 %v5440_v62 }
 0x174   : > { %4539 = vmatprep.mubr.bf16.mxu0 %v5431_v9 }
 0x179   : > { %4492 = vmatmul.mubr.bf16.gmra.mxu1 %v5194_v43  ;;  %v4946_v43 = vld [vmem:[%s6595_s2 + $0xa8] sm:$0xff]  }
 0x17a   : > { %4559 = vmatprep.mubr.bf16.mxu1 %v5221_v4  ;;  %v4947_v4 = vld [vmem:[%s6595_s2 + $0xa0] sm:$0xff]  }
 0x17b   : > { %4540 = vmatmul.mubr.bf16.gmra.mxu0 %v5477_v8 }
 0x17c   : > { %4607 = vmatprep.mubr.bf16.mxu0 %v5218_v63 }
 0x181   : > { %4560 = vmatmul.mubr.bf16.vlgmr.msra.gmra.mxu1 %v5218_v63  ;;  %v4952_v63 = vld [vmem:[%s6595_s2 + $0x168] sm:$0xff]  }
 0x182   : > { %4640 = vmatpush3.bf16.msra.mxu1 %v4944_v58  ;;  %4563 = vmatprep.mubr.bf16.mxu1 %v5254_v37 }
 0x183   : > { %4608 = vmatmul.mubr.bf16.vlgmr.msra.gmra.mxu0 %v5254_v37  ;;  %4641 = vmatprep.subr.bf16.mxu1 %v4945_v40  ;;  %v4953_v37 = vld [vmem:[%s6595_s2 + $0x160] sm:$0xff]  }
 0x184   : > { %4611 = vmatprep.mubr.bf16.mxu0 %v5244_v30  ;;  %4688 = vmatpush3.bf16.msra.mxu0 %v4949_v56 }
 0x185   : > { %4689 = vmatprep.subr.bf16.mxu0 %v4950_v35 }
 0x186   : > { %4642 = vmatpush3.bf16.msra.mxu1 %v4945_v40 }
 0x187   : > { %4643 = vmatprep.subr.bf16.mxu1 %v4946_v43 }
 0x188   : > { %4690 = vmatpush3.bf16.msra.mxu0 %v4950_v35 }
 0x189   : > { %4564 = vmatmul.mubr.bf16.gmra.mxu1 %v5244_v30  ;;  %4691 = vmatprep.subr.bf16.mxu0 %v4952_v63  ;;  %v4955_v30 = vld [vmem:[%s6595_s2 + $0x158] sm:$0xff]  }
 0x18a   : > { %4567 = vmatprep.mubr.bf16.mxu1 %v5314_v25  ;;  %4644 = vmatpush3.bf16.msra.mxu1 %v4946_v43 }
 0x18b   : > { %4612 = vmatmul.mubr.bf16.gmra.mxu0 %v5314_v25  ;;  %4645 = vmatprep.subr.bf16.mxu1 %v4947_v4  ;;  %v4956_v25 = vld [vmem:[%s6595_s2 + $0x150] sm:$0xff]  }
 0x18c   : > { %4615 = vmatprep.mubr.bf16.mxu0 %v5302_v14  ;;  %4692 = vmatpush3.bf16.msra.mxu0 %v4952_v63  ;;  %v4965_v63 = vld [vmem:[%s6595_s2 + $0x210] sm:$0xff]  }
 0x18d   : > { %4693 = vmatprep.subr.bf16.mxu0 %v4953_v37 }
 0x18e   : > { %4646 = vmatpush3.bf16.msra.mxu1 %v4947_v4 }
 0x18f   : > { %4647 = vmatprep.subr.bf16.mxu1 %v4948_v29 }
 0x190   : > { %4694 = vmatpush3.bf16.msra.mxu0 %v4953_v37 }
 0x191   : > { %4568 = vmatmul.mubr.bf16.gmra.mxu1 %v5302_v14  ;;  %4695 = vmatprep.subr.bf16.mxu0 %v4955_v30  ;;  %v4958_v14 = vld [vmem:[%s6595_s2 + $0x148] sm:$0xff]  }
 0x192   : > { %4571 = vmatprep.mubr.bf16.mxu1 %v5384_v38  ;;  %4648 = vmatpush3.bf16.msra.mxu1 %v4948_v29 }
 0x193   : > { %4616 = vmatmul.mubr.bf16.gmra.mxu0 %v5384_v38  ;;  %4649 = vmatprep.subr.bf16.mxu1 %v4951_v61  ;;  %v4959_v38 = vld [vmem:[%s6595_s2 + $0x140] sm:$0xff]  }
 0x194   : > { %4619 = vmatprep.mubr.bf16.mxu0 %v5372_v15  ;;  %4696 = vmatpush3.bf16.msra.mxu0 %v4955_v30 }
 0x195   : > { %4697 = vmatprep.subr.bf16.mxu0 %v4956_v25 }
 0x196   : > { %4650 = vmatpush3.bf16.msra.mxu1 %v4951_v61  ;;  %v5850_v61 = vsel %vm5572_vm5, %v5521_v57, 0  ;;  %v4966_v57 = vld [vmem:[%s6595_s2 + $0x208] sm:$0xff]  }
 0x197   : > { %4651 = vmatprep.subr.bf16.mxu1 %v4954_v1 }
 0x198   : > { %4698 = vmatpush3.bf16.msra.mxu0 %v4956_v25 }
 0x199   : > { %4572 = vmatmul.mubr.bf16.gmra.mxu1 %v5372_v15  ;;  %4699 = vmatprep.subr.bf16.mxu0 %v4958_v14  ;;  %v5780_v15 = vld [vmem:[%s6598_s5] ss:$0 sm:$0xff] }
 0x19a   : > { %4575 = vmatprep.mubr.bf16.mxu1 %v5266_v51  ;;  %4652 = vmatpush3.bf16.msra.mxu1 %v4954_v1 }
 0x19b   : > { %4620 = vmatmul.mubr.bf16.gmra.mxu0 %v5266_v51  ;;  %4653 = vmatprep.subr.bf16.mxu1 %v4957_v0  ;;  %v2442_v51 = vrot.slane %v6609_v52, 1 }
 0x19c   : > { %4623 = vmatprep.mubr.bf16.mxu0 %v5307_v20  ;;  %4700 = vmatpush3.bf16.msra.mxu0 %v4958_v14 }
 0x19d   : > { %4701 = vmatprep.subr.bf16.mxu0 %v4959_v38 }
 0x19e   : > { %4654 = vmatpush3.bf16.msra.mxu1 %v4957_v0 }
 0x19f   : > { %4735 = vmatprep.subr.bf16.mxu1 %v4960_v10 }
 0x1a0   : > { %4702 = vmatpush3.bf16.msra.mxu0 %v4959_v38  ;;  %v5860_v38 = vsel %vm5572_vm5, %v5529_v49, 0 }
 0x1a1   : > { %4576 = vmatmul.mubr.bf16.gmra.mxu1 %v5307_v20  ;;  %v5769_v20 = vsel %vm5572_vm5, %v2442_v51, 0 }
 0x1a2   : > { %4579 = vmatprep.mubr.bf16.mxu1 %v5377_v32 }
 0x1a3   : > { %4624 = vmatmul.mubr.bf16.gmra.mxu0 %v5377_v32  ;;  %v4961_v32 = vld [vmem:[%s6595_s2 + $0x230] sm:$0xff]  }
 0x1a4   : > { %4627 = vmatprep.mubr.bf16.mxu0 %v5429_v27 }
 0x1a9   : > { %4580 = vmatmul.mubr.bf16.gmra.mxu1 %v5429_v27 }
 0x1aa   : > { %4583 = vmatprep.mubr.bf16.mxu1 %v5440_v62 }
 0x1ab   : > { %4628 = vmatmul.mubr.bf16.gmra.mxu0 %v5440_v62  ;;  %v5788_v62 = vsel %vm5572_vm5, %v5495_v6, 0  ;;  %v4962_v6 = vld [vmem:[%s6595_s2 + $0x228] sm:$0xff]  }
 0x1ac   : > { %4631 = vmatprep.mubr.bf16.mxu0 %v5431_v9 }
 0x1b1   : > { %4584 = vmatmul.mubr.bf16.gmra.mxu1 %v5431_v9  ;;  %v2497_v9 = vsel %vm5572_vm5, %v5487_v17, 0 }
 0x1b2   : > { %4587 = vmatprep.mubr.bf16.mxu1 %v5477_v8 }
 0x1b3   : > { %4632 = vmatmul.mubr.bf16.gmra.mxu0 %v5477_v8 }
 0x1b4   : > { %4635 = vmatprep.mubr.bf16.mxu0 %v5446_v21 }
 0x1b9   : > { %4588 = vmatmul.mubr.bf16.gmra.mxu1 %v5446_v21 }
 0x1ba   : > { %4655 = vmatprep.mubr.bf16.mxu1 %v5769_v20 }
 0x1bb   : > { %4636 = vmatmul.mubr.bf16.gmra.mxu0 %v6609_v52 }
 0x1bc   : > { %4703 = vmatprep.mubr.bf16.mxu0 %v2497_v9 }
 0x1c1   : > { %v4369_v27 = vpop.f32.mrf.mxu1  ;;  %4656 = vmatmul.mubr.bf16.vlgmr.msra.gmra.mxu1 %v2497_v9 }
 0x1c2   : > { %v1122_v21 = vadd.f32 %v4369_v27, %v5780_v15  ;;  %4736 = vmatpush3.bf16.msra.mxu1 %v4960_v10  ;;  %4659 = vmatprep.mubr.bf16.mxu1 %v5788_v62 }
 0x1c3   : > { %v4417_v8 = vpop.f32.mrf.mxu0  ;;  %4704 = vmatmul.mubr.bf16.vlgmr.msra.gmra.mxu0 %v5788_v62  ;;  %v993_v17 = vpop.f32.mrf.mxu1  ;;  %4737 = vmatprep.subr.bf16.mxu1 %v4961_v32 }
 0x1c4   : > { %v5801_v3 = vadd.f32 %v4417_v8, %v1122_v21  ;;  %v1120_v46 = vadd.f32 %v5780_v15, %v993_v17  ;;  %4707 = vmatprep.mubr.bf16.mxu0 %v5796_v23  ;;  %v4967_v17 = vld [vmem:[%s6595_s2 + $0x200] sm:$0xff]  }
 0x1c5   : > { %v1251_v47 = vpop.f32.mrf.mxu0  ;;  %v4370_v16 = vpop.f32.mrf.mxu1 }
 0x1c6   : > { %v5805_v7 = vadd.f32 %v1251_v47, %v1120_v46  ;;  %v1123_v52 = vadd.f32 %v4370_v16, %v5780_v15  ;;  %4738 = vmatpush3.bf16.msra.mxu1 %v4961_v32 }
 0x1c7   : > { %v4418_v11 = vpop.f32.mrf.mxu0  ;;  %v996_v54 = vpop.f32.mrf.mxu1  ;;  %4739 = vmatprep.subr.bf16.mxu1 %v4962_v6 }
 0x1c8   : > { %v5811_v42 = vadd.f32 %v4418_v11, %v1123_v52  ;;  %v1121_v48 = vadd.f32 %v5780_v15, %v996_v54  ;;  %v5882_v52 = vsel %vm5572_vm5, %v5540_v28, 0 }
 0x1c9   : > { %v1254_v26 = vpop.f32.mrf.mxu0  ;;  %v4373_v34 = vpop.f32.mrf.mxu1  ;;  %4660 = vmatmul.mubr.bf16.gmra.mxu1 %v5796_v23 }
 0x1ca   : > { %v5820_v39 = vadd.f32 %v1254_v26, %v1121_v48  ;;  %v1126_v18 = vadd.f32 %v4373_v34, %v5780_v15  ;;  %4663 = vmatprep.mubr.bf16.mxu1 %v5818_v41  ;;  %4740 = vmatpush3.bf16.msra.mxu1 %v4962_v6  ;;  %v5892_v26 = vsel %vm5572_vm5, %v5544_v44, 0 }
 0x1cb   : > { %v4421_v36 = vpop.f32.mrf.mxu0  ;;  %4708 = vmatmul.mubr.bf16.gmra.mxu0 %v5818_v41  ;;  %v1009_v33 = vpop.f32.mrf.mxu1  ;;  %4741 = vmatprep.subr.bf16.mxu1 %v4963_v13 }
 0x1cc   : > { %v5833_v19 = vadd.f32 %v4421_v36, %v1126_v18  ;;  %v1124_v50 = vadd.f32 %v5780_v15, %v1009_v33  ;;  %4711 = vmatprep.mubr.bf16.mxu0 %v5828_v53 }
 0x1cd   : > { %v1267_v58 = vpop.f32.mrf.mxu0  ;;  %v4374_v56 = vpop.f32.mrf.mxu1 }
 0x1ce   : > { %v5837_v40 = vadd.f32 %v1267_v58, %v1124_v50  ;;  %v1127_v35 = vadd.f32 %v4374_v56, %v5780_v15  ;;  %4742 = vmatpush3.bf16.msra.mxu1 %v4963_v13 }
 0x1cf   : > { %v4422_v5 = vpop.f32.mrf.mxu0  ;;  %v1012_v43 = vpop.f32.mrf.mxu1  ;;  %4743 = vmatprep.subr.bf16.mxu1 %v4964_v12 }
 0x1d0   : > { %v5843_v4 = vadd.f32 %v4422_v5, %v1127_v35  ;;  %v1125_v37 = vadd.f32 %v5780_v15, %v1012_v43  ;;  %v5908_v43 = vsel %vm5572_vm5, %v5553_v60, 0 }
 0x1d1   : > { %v1270_v29 = vpop.f32.mrf.mxu0  ;;  %v4377_v30 = vpop.f32.mrf.mxu1  ;;  %4664 = vmatmul.mubr.bf16.gmra.mxu1 %v5828_v53 }
 0x1d2   : > { %v5852_v25 = vadd.f32 %v1270_v29, %v1125_v37  ;;  %v1130_v1 = vadd.f32 %v4377_v30, %v5780_v15  ;;  %4667 = vmatprep.mubr.bf16.mxu1 %v5850_v61  ;;  %4744 = vmatpush3.bf16.msra.mxu1 %v4964_v12 }
 0x1d3   : > { %v4425_v14 = vpop.f32.mrf.mxu0  ;;  %4712 = vmatmul.mubr.bf16.gmra.mxu0 %v5850_v61  ;;  %v1025_v0 = vpop.f32.mrf.mxu1  ;;  %4745 = vmatprep.subr.bf16.mxu1 %v4965_v63 }
 0x1d4   : > { %v5865_v10 = vadd.f32 %v4425_v14, %v1130_v1  ;;  %v1128_v51 = vadd.f32 %v5780_v15, %v1025_v0  ;;  %4715 = vmatprep.mubr.bf16.mxu0 %v5860_v38  ;;  %v5918_v1 = vsel %vm5572_vm5, %v5557_v22, 0 }
 0x1d5   : > { %v1283_v9 = vpop.f32.mrf.mxu0  ;;  %v4378_v32 = vpop.f32.mrf.mxu1 }
 0x1d6   : > { %v5869_v27 = vadd.f32 %v1283_v9, %v1128_v51  ;;  %v1131_v21 = vadd.f32 %v4378_v32, %v5780_v15  ;;  %4746 = vmatpush3.bf16.msra.mxu1 %v4965_v63 }
 0x1d7   : > { %v4426_v49 = vpop.f32.mrf.mxu0  ;;  %v1028_v8 = vpop.f32.mrf.mxu1  ;;  %4747 = vmatprep.subr.bf16.mxu1 %v4966_v57 }
 0x1d8   : > { %v5875_v6 = vadd.f32 %v4426_v49, %v1131_v21  ;;  %v1129_v46 = vadd.f32 %v5780_v15, %v1028_v8 }
 0x1d9   : > { %v1286_v47 = vpop.f32.mrf.mxu0  ;;  %v4381_v16 = vpop.f32.mrf.mxu1  ;;  %4668 = vmatmul.mubr.bf16.gmra.mxu1 %v5860_v38 }
 0x1da   : > { %v5884_v11 = vadd.f32 %v1286_v47, %v1129_v46  ;;  %v1134_v54 = vadd.f32 %v4381_v16, %v5780_v15  ;;  %4671 = vmatprep.mubr.bf16.mxu1 %v5882_v52  ;;  %4748 = vmatpush3.bf16.msra.mxu1 %v4966_v57 }
 0x1db   : > { %v4429_v13 = vpop.f32.mrf.mxu0  ;;  %4716 = vmatmul.mubr.bf16.gmra.mxu0 %v5882_v52  ;;  %v1041_v48 = vpop.f32.mrf.mxu1  ;;  %4749 = vmatprep.subr.bf16.mxu1 %v4967_v17 }
 0x1dc   : > { %v5894_v34 = vadd.f32 %v4429_v13, %v1134_v54  ;;  %v1132_v28 = vadd.f32 %v5780_v15, %v1041_v48  ;;  %4719 = vmatprep.mubr.bf16.mxu0 %v5892_v26  ;;  %v5945_v54 = vsel %vm5572_vm5, %v5563_v55, 0 }
 0x1dd   : > { %v1299_v18 = vpop.f32.mrf.mxu0  ;;  %v4382_v36 = vpop.f32.mrf.mxu1 }
 0x1de   : > { %v5898_v33 = vadd.f32 %v1299_v18, %v1132_v28  ;;  %v1135_v12 = vadd.f32 %v4382_v36, %v5780_v15  ;;  %4750 = vmatpush3.bf16.msra.mxu1 %v4967_v17  ;;  %v5937_v17 = vsel %vm5572_vm5, %v5559_v24, 0 }
 0x1df   : > { %v4430_v50 = vpop.f32.mrf.mxu0  ;;  %v1044_v58 = vpop.f32.mrf.mxu1 }
 0x1e0   : > { %v5901_v56 = vadd.f32 %v4430_v50, %v1135_v12  ;;  %v1133_v44 = vadd.f32 %v5780_v15, %v1044_v58 }
 0x1e1   : > { %v1302_v35 = vpop.f32.mrf.mxu0  ;;  %v4385_v5 = vpop.f32.mrf.mxu1  ;;  %4672 = vmatmul.mubr.bf16.gmra.mxu1 %v5892_v26 }
 0x1e2   : > { %v5910_v63 = vadd.f32 %v1302_v35, %v1133_v44  ;;  %v1138_v37 = vadd.f32 %v4385_v5, %v5780_v15  ;;  %4675 = vmatprep.mubr.bf16.mxu1 %v5908_v43  ;;  %v5964_v35 = vsel %vm5572_vm5, %v5568_v59, 0 }
 0x1e3   : > { %v4433_v29 = vpop.f32.mrf.mxu0  ;;  %4720 = vmatmul.mubr.bf16.gmra.mxu0 %v5908_v43  ;;  %v1057_v30 = vpop.f32.mrf.mxu1 }
 0x1e4   : > { %v5920_v14 = vadd.f32 %v4433_v29, %v1138_v37  ;;  %v1136_v60 = vadd.f32 %v5780_v15, %v1057_v30  ;;  %4723 = vmatprep.mubr.bf16.mxu0 %v5918_v1  ;;  %v5972_v30 = vsel %vm5572_vm5, %v5570_v31, 0 }
 0x1e5   : > { %v1315_v0 = vpop.f32.mrf.mxu0  ;;  %v4386_v57 = vpop.f32.mrf.mxu1 }
 0x1e6   : > { %v5924_v51 = vadd.f32 %v1315_v0, %v1136_v60  ;;  %v1139_v9 = vadd.f32 %v4386_v57, %v5780_v15 }
 0x1e7   : > { %v4434_v32 = vpop.f32.mrf.mxu0  ;;  %v5927_v21 = vpop.f32.mrf.mxu1 }
 0x1e8   : > { %v5929_v49 = vadd.f32 %v4434_v32, %v1139_v9 }
 0x1e9   : > { %v5931_v8 = vpop.f32.mrf.mxu0  ;;  %v4389_v22 = vpop.f32.mrf.mxu1  ;;  %4676 = vmatmul.mubr.bf16.gmra.mxu1 %v5918_v1 }
 0x1ea   : > { %v1142_v46 = vadd.f32 %v4389_v22, %v5780_v15  ;;  %4679 = vmatprep.mubr.bf16.mxu1 %v5937_v17 }
 0x1eb   : > { %v4437_v47 = vpop.f32.mrf.mxu0  ;;  %4724 = vmatmul.mubr.bf16.gmra.mxu0 %v5937_v17  ;;  %v1073_v16 = vpop.f32.mrf.mxu1 }
 0x1ec   : > { %v5947_v13 = vadd.f32 %v4437_v47, %v1142_v46  ;;  %v1140_v48 = vadd.f32 %v5780_v15, %v1073_v16  ;;  %4727 = vmatprep.mubr.bf16.mxu0 %v5945_v54 }
 0x1ed   : > { %v1331_v24 = vpop.f32.mrf.mxu0  ;;  %v4390_v28 = vpop.f32.mrf.mxu1 }
 0x1ee   : > { %v5951_v18 = vadd.f32 %v1331_v24, %v1140_v48  ;;  %v1143_v36 = vadd.f32 %v4390_v28, %v5780_v15 }
 0x1ef   : > { %v4438_v12 = vpop.f32.mrf.mxu0  ;;  %v5954_v50 = vpop.f32.mrf.mxu1 }
 0x1f0   : > { %v5956_v58 = vadd.f32 %v4438_v12, %v1143_v36 }
 0x1f1   : > { %v5958_v44 = vpop.f32.mrf.mxu0  ;;  %v4393_v55 = vpop.f32.mrf.mxu1  ;;  %4680 = vmatmul.mubr.bf16.gmra.mxu1 %v5945_v54 }
 0x1f2   : > { %v1146_v5 = vadd.f32 %v4393_v55, %v5780_v15  ;;  %4683 = vmatprep.mubr.bf16.mxu1 %v5964_v35 }
 0x1f3   : > { %v4441_v37 = vpop.f32.mrf.mxu0  ;;  %4728 = vmatmul.mubr.bf16.gmra.mxu0 %v5964_v35  ;;  %v1089_v29 = vpop.f32.mrf.mxu1 }
 0x1f4   : > { %v5974_v60 = vadd.f32 %v4441_v37, %v1146_v5  ;;  %v1144_v0 = vadd.f32 %v5780_v15, %v1089_v29  ;;  %4731 = vmatprep.mubr.bf16.mxu0 %v5972_v30 }
 0x1f5   : > { %v1347_v59 = vpop.f32.mrf.mxu0  ;;  %v4394_v57 = vpop.f32.mrf.mxu1 }
 0x1f6   : > { %v5978_v9 = vadd.f32 %v1347_v59, %v1144_v0  ;;  %v1147_v32 = vadd.f32 %v4394_v57, %v5780_v15 }
 0x1f7   : > { %v4442_v22 = vpop.f32.mrf.mxu0  ;;  %v5981_v46 = vpop.f32.mrf.mxu1 }
 0x1f8   : > { %v5983_v47 = vadd.f32 %v4442_v22, %v1147_v32 }
 0x1f9   : > { %v5985_v2 = vpop.f32.mrf.mxu0  ;;  %v4397_v31 = vpop.f32.mrf.mxu1  ;;  %4684 = vmatmul.mubr.bf16.gmra.mxu1 %v5972_v30 }
 0x1fa   : > { %v1150_v16 = vadd.f32 %v4397_v31, %v5780_v15  ;;  %4751 = vmatprep.mubr.bf16.mxu1 %v5788_v62 }
 0x1fb   : > { %v4445_v48 = vpop.f32.mrf.mxu0  ;;  %4732 = vmatmul.mubr.bf16.gmra.mxu0 %v5583_v45  ;;  %v1105_v24 = vpop.f32.mrf.mxu1 }
 0x1fc   : > { %v5991_v28 = vadd.f32 %v4445_v48, %v1150_v16  ;;  %v1148_v36 = vadd.f32 %v5780_v15, %v1105_v24 }
 0x1fd   : > { %v1363_v12 = vpop.f32.mrf.mxu0  ;;  %v4398_v55 = vpop.f32.mrf.mxu1 }
 0x1fe   : > { %v5994_v5 = vadd.f32 %v1363_v12, %v1148_v36  ;;  %v1151_v37 = vadd.f32 %v4398_v55, %v5780_v15 }
 0x1ff   : > { %v4446_v29 = vpop.f32.mrf.mxu0  ;;  %v5997_v0 = vpop.f32.mrf.mxu1 }
 0x200   : > { %v5999_v59 = vadd.f32 %v4446_v29, %v1151_v37 }
 0x201   : > { %v6001_v62 = vpop.f32.mrf.mxu0  ;;  %v4465_v57 = vpop.f32.mrf.mxu1  ;;  %4752 = vmatmul.mubr.bf16.vlgmr.msra.gmra.mxu1 %v5796_v23 }
 0x202   : > { %6610 = vst [vmem:[#allocation2_spill] sm:$0xff] %v5999_v59  ;;  %v1638_v32 = vadd.f32 %v4465_v57, %v5801_v3  ;;  %4755 = vmatprep.mubr.bf16.mxu1 %v5818_v41 }
 0x203   : > { %v4513_v22 = vpop.f32.mrf.mxu0  ;;  %v1509_v31 = vpop.f32.mrf.mxu1 }
 0x204   : > { %v6006_v16 = vadd.f32 %v4513_v22, %v1638_v32  ;;  %v1636_v48 = vadd.f32 %v1509_v31, %v5805_v7 }
 0x205   : > { %v1767_v24 = vpop.f32.mrf.mxu0  ;;  %v4466_v36 = vpop.f32.mrf.mxu1 }
 0x206   : > { %v6009_v12 = vadd.f32 %v1767_v24, %v1636_v48  ;;  %v1639_v55 = vadd.f32 %v4466_v36, %v5811_v42 }
 0x207   : > { %v4514_v37 = vpop.f32.mrf.mxu0  ;;  %v1512_v29 = vpop.f32.mrf.mxu1 }
 0x208   : > { %v6012_v59 = vadd.f32 %v4514_v37, %v1639_v55  ;;  %v6015_v23 = vadd.f32 %v1512_v29, %v5820_v39 }
 0x209   : > { %v6017_v3 = vpop.f32.mrf.mxu0  ;;  %v4469_v41 = vpop.f32.mrf.mxu1  ;;  %4756 = vmatmul.mubr.bf16.gmra.mxu1 %v5828_v53 }
 0x20a   : > { %v1642_v7 = vadd.f32 %v4469_v41, %v5833_v19  ;;  %4759 = vmatprep.mubr.bf16.mxu1 %v5850_v61  ;;  %v4968_v19 = vld [vmem:[%s6596_s3 + $0x38] sm:$0xff]  }
 0x20b   : > { %v4517_v57 = vpop.f32.mrf.mxu0  ;;  %v1525_v32 = vpop.f32.mrf.mxu1  ;;  %4783 = vmatprep.subr.bf16.mxu0 %v4968_v19 }
 0x20c   : > { %v6022_v22 = vadd.f32 %v4517_v57, %v1642_v7  ;;  %v1640_v42 = vadd.f32 %v1525_v32, %v5837_v40  ;;  %4784 = vmatpush3.bf16.msra.mxu0 %v4968_v19 }
 0x20d   : > { %v1783_v31 = vpop.f32.mrf.mxu0  ;;  %v4470_v48 = vpop.f32.mrf.mxu1 }
 0x20e   : > { %v6025_v24 = vadd.f32 %v1783_v31, %v1640_v42  ;;  %v1643_v39 = vadd.f32 %v4470_v48, %v5843_v4 }
 0x20f   : > { %v4518_v36 = vpop.f32.mrf.mxu0  ;;  %v1528_v55 = vpop.f32.mrf.mxu1 }
 0x210   : > { %v6028_v37 = vadd.f32 %v4518_v36, %v1643_v39  ;;  %v6031_v53 = vadd.f32 %v1528_v55, %v5852_v25 }
 0x211   : > { %v6036_v61 = vpop.f32.mrf.mxu0  ;;  %v4473_v40 = vpop.f32.mrf.mxu1  ;;  %4760 = vmatmul.mubr.bf16.gmra.mxu1 %v5860_v38 }
 0x212   : > { %v1646_v29 = vadd.f32 %v4473_v40, %v5865_v10  ;;  %4763 = vmatprep.mubr.bf16.mxu1 %v5882_v52  ;;  %v4969_v52 = vld [vmem:[%s6596_s3 + $0x30] sm:$0xff]  }
 0x213   : > { %v4521_v4 = vpop.f32.mrf.mxu0  ;;  %v1541_v41 = vpop.f32.mrf.mxu1  ;;  %4785 = vmatprep.subr.bf16.mxu0 %v4969_v52 }
 0x214   : > { %v6041_v7 = vadd.f32 %v4521_v4, %v1646_v29  ;;  %v1644_v25 = vadd.f32 %v1541_v41, %v5869_v27  ;;  %4786 = vmatpush3.bf16.msra.mxu0 %v4969_v52 }
 0x215   : > { %v1799_v57 = vpop.f32.mrf.mxu0  ;;  %v4474_v32 = vpop.f32.mrf.mxu1 }
 0x216   : > { %v6044_v42 = vadd.f32 %v1799_v57, %v1644_v25  ;;  %v1647_v31 = vadd.f32 %v4474_v32, %v5875_v6 }
 0x217   : > { %v4522_v48 = vpop.f32.mrf.mxu0  ;;  %v1544_v38 = vpop.f32.mrf.mxu1 }
 0x218   : > { %v6047_v39 = vadd.f32 %v4522_v48, %v1647_v31  ;;  %v6050_v10 = vadd.f32 %v1544_v38, %v5884_v11  ;;  %v1137_v48 = vadd.f32 %v5780_v15, %v5927_v21 }
 0x219   : > { %v6055_v36 = vpop.f32.mrf.mxu0  ;;  %v4477_v27 = vpop.f32.mrf.mxu1  ;;  %4764 = vmatmul.mubr.bf16.gmra.mxu1 %v5892_v26 }
 0x21a   : > { %v1650_v55 = vadd.f32 %v4477_v27, %v5894_v34  ;;  %4767 = vmatprep.mubr.bf16.mxu1 %v5908_v43  ;;  %v4970_v43 = vld [vmem:[%s6596_s3 + $0x28] sm:$0xff]  }
 0x21b   : > { %v4525_v6 = vpop.f32.mrf.mxu0  ;;  %v1557_v19 = vpop.f32.mrf.mxu1  ;;  %4787 = vmatprep.subr.bf16.mxu0 %v4970_v43 }
 0x21c   : > { %v6060_v40 = vadd.f32 %v4525_v6, %v1650_v55  ;;  %v1648_v11 = vadd.f32 %v1557_v19, %v5898_v33  ;;  %4788 = vmatpush3.bf16.msra.mxu0 %v4970_v43  ;;  %v1395_v19 = vadd.f32 %v5931_v8, %v1137_v48 }
 0x21d   : > { %v1815_v29 = vpop.f32.mrf.mxu0  ;;  %v4478_v4 = vpop.f32.mrf.mxu1 }
 0x21e   : > { %v6063_v41 = vadd.f32 %v1815_v29, %v1648_v11  ;;  %v1651_v25 = vadd.f32 %v4478_v4, %v5901_v56  ;;  %v4971_v4 = vld [vmem:[%s6596_s3 + $0x20] sm:$0xff]  }
 0x21f   : > { %v4526_v57 = vpop.f32.mrf.mxu0  ;;  %v1560_v26 = vpop.f32.mrf.mxu1  ;;  %4789 = vmatprep.subr.bf16.mxu0 %v4971_v4 }
 0x220   : > { %v6066_v32 = vadd.f32 %v4526_v57, %v1651_v25  ;;  %v6069_v34 = vadd.f32 %v1560_v26, %v5910_v63  ;;  %4790 = vmatpush3.bf16.msra.mxu0 %v4971_v4 }
 0x221   : > { %v6074_v31 = vpop.f32.mrf.mxu0  ;;  %v4481_v33 = vpop.f32.mrf.mxu1  ;;  %4768 = vmatmul.mubr.bf16.gmra.mxu1 %v5918_v1 }
 0x222   : > { %v1654_v56 = vadd.f32 %v4481_v33, %v5920_v14  ;;  %4771 = vmatprep.mubr.bf16.mxu1 %v5937_v17 }
 0x223   : > { %v4529_v38 = vpop.f32.mrf.mxu0  ;;  %v1573_v63 = vpop.f32.mrf.mxu1 }
 0x224   : > { %v6081_v52 = vadd.f32 %v4529_v38, %v1654_v56  ;;  %v1652_v27 = vadd.f32 %v1573_v63, %v5924_v51  ;;  %v1141_v51 = vadd.f32 %v5780_v15, %v5954_v50 }
 0x225   : > { %v1831_v55 = vpop.f32.mrf.mxu0  ;;  %v4482_v6 = vpop.f32.mrf.mxu1 }
 0x226   : > { %v6085_v1 = vadd.f32 %v1831_v55, %v1652_v27  ;;  %v1655_v21 = vadd.f32 %v4482_v6, %v5929_v49  ;;  %v4972_v6 = vld [vmem:[%s6596_s3 + $0x18] sm:$0xff]  }
 0x227   : > { %v4530_v11 = vpop.f32.mrf.mxu0  ;;  %v1576_v14 = vpop.f32.mrf.mxu1  ;;  %4791 = vmatprep.subr.bf16.mxu0 %v4972_v6 }
 0x228   : > { %v6088_v29 = vadd.f32 %v4530_v11, %v1655_v21  ;;  %v1653_v17 = vadd.f32 %v1576_v14, %v1395_v19  ;;  %4792 = vmatpush3.bf16.msra.mxu0 %v4972_v6 }
 0x229   : > { %v1834_v25 = vpop.f32.mrf.mxu0  ;;  %v4485_v57 = vpop.f32.mrf.mxu1  ;;  %4772 = vmatmul.mubr.bf16.gmra.mxu1 %v5945_v54  ;;  %v1399_v54 = vadd.f32 %v5958_v44, %v1141_v51 }
 0x22a   : > { %v6096_v8 = vadd.f32 %v1834_v25, %v1653_v17  ;;  %v1658_v49 = vadd.f32 %v4485_v57, %v5947_v13  ;;  %4775 = vmatprep.mubr.bf16.mxu1 %v5964_v35 }
 0x22b   : > { %v4533_v26 = vpop.f32.mrf.mxu0  ;;  %v1589_v43 = vpop.f32.mrf.mxu1 }
 0x22c   : > { %v6100_v33 = vadd.f32 %v4533_v26, %v1658_v49  ;;  %v1656_v48 = vadd.f32 %v1589_v43, %v5951_v18  ;;  %v1145_v18 = vadd.f32 %v5780_v15, %v5981_v46  ;;  %v4973_v43 = vld [vmem:[%s6596_s3 + $0x10] sm:$0xff]  }
 0x22d   : > { %v1847_v56 = vpop.f32.mrf.mxu0  ;;  %v4486_v38 = vpop.f32.mrf.mxu1  ;;  %4793 = vmatprep.subr.bf16.mxu0 %v4973_v43 }
 0x22e   : > { %v6104_v63 = vadd.f32 %v1847_v56, %v1656_v48  ;;  %v1659_v50 = vadd.f32 %v4486_v38, %v5956_v58  ;;  %4794 = vmatpush3.bf16.msra.mxu0 %v4973_v43 }
 0x22f   : > { %v4534_v27 = vpop.f32.mrf.mxu0  ;;  %v1592_v13 = vpop.f32.mrf.mxu1 }
 0x230   : > { %v6107_v55 = vadd.f32 %v4534_v27, %v1659_v50  ;;  %v1657_v35 = vadd.f32 %v1592_v13, %v1399_v54 }
 0x231   : > { %v1850_v19 = vpop.f32.mrf.mxu0  ;;  %v4489_v21 = vpop.f32.mrf.mxu1  ;;  %4776 = vmatmul.mubr.bf16.gmra.mxu1 %v5972_v30  ;;  %v1403_v30 = vadd.f32 %v5985_v2, %v1145_v18 }
 0x232   : > { %v6115_v44 = vadd.f32 %v1850_v19, %v1657_v35  ;;  %v1662_v58 = vadd.f32 %v4489_v21, %v5974_v60  ;;  %4779 = vmatprep.mubr.bf16.mxu1 %v5583_v45  ;;  %v6611_v19 = vld [vmem:[#allocation2_spill] sm:$0xff] }
 0x233   : > { %v4537_v11 = vpop.f32.mrf.mxu0  ;;  %v1605_v14 = vpop.f32.mrf.mxu1 }
 0x234   : > { %v6119_v17 = vadd.f32 %v4537_v11, %v1662_v58  ;;  %v1660_v4 = vadd.f32 %v1605_v14, %v5978_v9  ;;  %v1149_v9 = vadd.f32 %v5780_v15, %v5997_v0  ;;  %v4974_v58 = vld [vmem:[%s6596_s3 + $0x8] sm:$0xff]  }
 0x235   : > { %v1863_v25 = vpop.f32.mrf.mxu0  ;;  %v4490_v57 = vpop.f32.mrf.mxu1  ;;  %4795 = vmatprep.subr.bf16.mxu0 %v4974_v58 }
 0x236   : > { %v6123_v51 = vadd.f32 %v1863_v25, %v1660_v4  ;;  %v1663_v46 = vadd.f32 %v4490_v57, %v5983_v47  ;;  %v1407_v6 = vadd.f32 %v6001_v62, %v1149_v9  ;;  %4796 = vmatpush3.bf16.msra.mxu0 %v4974_v58 }
 0x237   : > { %v4538_v49 = vpop.f32.mrf.mxu0  ;;  %v1608_v60 = vpop.f32.mrf.mxu1 }
 0x238   : > { %v6126_v26 = vadd.f32 %v4538_v49, %v1663_v46  ;;  %v1661_v45 = vadd.f32 %v1608_v60, %v1403_v30  ;;  %v1895_v60 = vadd.f32 %v6017_v3, %v6015_v23 }
 0x239   : > { %v1866_v48 = vpop.f32.mrf.mxu0  ;;  %v4493_v56 = vpop.f32.mrf.mxu1  ;;  %4780 = vmatmul.mubr.bf16.gmra.mxu1 %v5769_v20 }
 0x23a   : > { %v6134_v2 = vadd.f32 %v1866_v48, %v1661_v45  ;;  %v1666_v47 = vadd.f32 %v4493_v56, %v5991_v28 }
 0x23b   : > { %v4541_v38 = vpop.f32.mrf.mxu0  ;;  %v1621_v54 = vpop.f32.mrf.mxu1 }
 0x23c   : > { %v6137_v50 = vadd.f32 %v4541_v38, %v1666_v47  ;;  %v1664_v27 = vadd.f32 %v1621_v54, %v5994_v5  ;;  %v4975_v38 = vld [vmem:[%s6596_s3] sm:$0xff]  }
 0x23d   : > { %v1879_v13 = vpop.f32.mrf.mxu0  ;;  %v4494_v35 = vpop.f32.mrf.mxu1  ;;  %4797 = vmatprep.subr.bf16.mxu0 %v4975_v38 }
 0x23e   : > { %v6141_v20 = vadd.f32 %v1879_v13, %v1664_v27  ;;  %v1667_v15 = vadd.f32 %v4494_v35, %v6611_v19  ;;  %4798 = vmatpush3.bf16.msra.mxu0 %v4975_v38  ;;  %v1899_v35 = vadd.f32 %v6036_v61, %v6031_v53 }
 0x23f   : > { %v4542_v0 = vpop.f32.mrf.mxu0  ;;  %v1624_v21 = vpop.f32.mrf.mxu1 }
 0x240   : > { %v6144_v18 = vadd.f32 %v4542_v0, %v1667_v15  ;;  %v1665_v28 = vadd.f32 %v1624_v21, %v1407_v6 }
 0x241   : > { %v1882_v11 = vpop.f32.mrf.mxu0  ;;  %v4561_v14 = vpop.f32.mrf.mxu1 }
 0x242   : > { %v6149_v5 = vadd.f32 %v1882_v11, %v1665_v28  ;;  %v2154_v4 = vadd.f32 %v4561_v14, %v6006_v16 }
 0x243   : > { %v4609_v62 = vpop.f32.mrf.mxu0  ;;  %v2025_v25 = vpop.f32.mrf.mxu1 }
 0x244   : > { %v6152_v57 = vadd.f32 %v4609_v62, %v2154_v4  ;;  %v2152_v30 = vadd.f32 %v2025_v25, %v6009_v12 }
 0x245   : > { %v2283_v46 = vpop.f32.mrf.mxu0  ;;  %v4562_v49 = vpop.f32.mrf.mxu1 }
 0x246   : > { %v6157_v45 = vadd.f32 %v2283_v46, %v2152_v30  ;;  %v6160_v43 = vadd.f32 %v4562_v49, %v6012_v59 }
 0x247   : > { %v6162_v48 = vpop.f32.mrf.mxu0  ;;  %v2028_v16 = vpop.f32.mrf.mxu1 }
 0x248   : > { %v6164_v56 = vadd.f32 %v2028_v16, %v1895_v60 }
 0x249   : > { %v6166_v9 = vpop.f32.mrf.mxu0  ;;  %v4565_v47 = vpop.f32.mrf.mxu1 }
 0x24a   : > { %v2158_v12 = vadd.f32 %v4565_v47, %v6022_v22 }
 0x24b   : > { %v4613_v23 = vpop.f32.mrf.mxu0  ;;  %v2041_v3 = vpop.f32.mrf.mxu1 }
 0x24c   : > { %v6172_v54 = vadd.f32 %v4613_v23, %v2158_v12  ;;  %v2156_v59 = vadd.f32 %v2041_v3, %v6025_v24 }
 0x24d   : > { %v2299_v27 = vpop.f32.mrf.mxu0  ;;  %v4566_v13 = vpop.f32.mrf.mxu1 }
 0x24e   : > { %v6177_v6 = vadd.f32 %v2299_v27, %v2156_v59  ;;  %v6180_v22 = vadd.f32 %v4566_v13, %v6028_v37  ;;  %v1903_v37 = vadd.f32 %v6055_v36, %v6050_v10 }
 0x24f   : > { %v6182_v19 = vpop.f32.mrf.mxu0  ;;  %v2044_v15 = vpop.f32.mrf.mxu1 }
 0x250   : > { %v6184_v0 = vadd.f32 %v2044_v15, %v1899_v35 }
 0x251   : > { %v6186_v21 = vpop.f32.mrf.mxu0  ;;  %v4569_v24 = vpop.f32.mrf.mxu1 }
 0x252   : > { %v2162_v28 = vadd.f32 %v4569_v24, %v6041_v7 }
 0x253   : > { %v4617_v58 = vpop.f32.mrf.mxu0  ;;  %v2057_v11 = vpop.f32.mrf.mxu1 }
 0x254   : > { %v6189_v14 = vadd.f32 %v4617_v58, %v2162_v28  ;;  %v2160_v53 = vadd.f32 %v2057_v11, %v6044_v42 }
 0x255   : > { %v2315_v61 = vpop.f32.mrf.mxu0  ;;  %v4570_v4 = vpop.f32.mrf.mxu1 }
 0x256   : > { %v6194_v62 = vadd.f32 %v2315_v61, %v2160_v53  ;;  %v6197_v25 = vadd.f32 %v4570_v4, %v6047_v39  ;;  %v1907_v39 = vadd.f32 %v6074_v31, %v6069_v34 }
 0x257   : > { %v6199_v30 = vpop.f32.mrf.mxu0  ;;  %v2060_v46 = vpop.f32.mrf.mxu1 }
 0x258   : > { %v6201_v7 = vadd.f32 %v2060_v46, %v1903_v37 }
 0x259   : > { %v6203_v49 = vpop.f32.mrf.mxu0  ;;  %v4573_v60 = vpop.f32.mrf.mxu1 }
 0x25a   : > { %v2166_v42 = vadd.f32 %v4573_v60, %v6060_v40 }
 0x25b   : > { %v4621_v16 = vpop.f32.mrf.mxu0  ;;  %v2073_v47 = vpop.f32.mrf.mxu1 }
 0x25c   : > { %v6206_v12 = vadd.f32 %v4621_v16, %v2166_v42  ;;  %v2164_v10 = vadd.f32 %v2073_v47, %v6063_v41 }
 0x25d   : > { %v2331_v36 = vpop.f32.mrf.mxu0  ;;  %v4574_v38 = vpop.f32.mrf.mxu1 }
 0x25e   : > { %v6211_v23 = vadd.f32 %v2331_v36, %v2164_v10  ;;  %v6214_v3 = vadd.f32 %v4574_v38, %v6066_v32 }
 0x25f   : > { %v6216_v59 = vpop.f32.mrf.mxu0  ;;  %v2076_v27 = vpop.f32.mrf.mxu1 }
 0x260   : > { %v6218_v40 = vadd.f32 %v2076_v27, %v1907_v39 }
 0x261   : > { %v6220_v13 = vpop.f32.mrf.mxu0  ;;  %v4577_v35 = vpop.f32.mrf.mxu1 }
 0x262   : > { %v2170_v41 = vadd.f32 %v4577_v35, %v6081_v52 }
 0x263   : > { %v4625_v15 = vpop.f32.mrf.mxu0  ;;  %v2089_v24 = vpop.f32.mrf.mxu1 }
 0x264   : > { %v6223_v28 = vadd.f32 %v4625_v15, %v2170_v41  ;;  %v2168_v34 = vadd.f32 %v2089_v24, %v6085_v1 }
 0x265   : > { %v2347_v31 = vpop.f32.mrf.mxu0  ;;  %v4578_v58 = vpop.f32.mrf.mxu1 }
 0x266   : > { %v6226_v32 = vadd.f32 %v2347_v31, %v2168_v34  ;;  %v6229_v11 = vadd.f32 %v4578_v58, %v6088_v29 }
 0x267   : > { %v6231_v53 = vpop.f32.mrf.mxu0  ;;  %v2092_v61 = vpop.f32.mrf.mxu1 }
 0x268   : > { %v6234_v4 = vadd.f32 %v2092_v61, %v6096_v8 }
 0x269   : > { %v6236_v52 = vpop.f32.mrf.mxu0  ;;  %v4581_v37 = vpop.f32.mrf.mxu1 }
 0x26a   : > { %v2174_v46 = vadd.f32 %v4581_v37, %v6100_v33 }
 0x26b   : > { %v4629_v60 = vpop.f32.mrf.mxu0  ;;  %v2105_v1 = vpop.f32.mrf.mxu1 }
 0x26c   : > { %v6239_v42 = vadd.f32 %v4629_v60, %v2174_v46  ;;  %v2172_v16 = vadd.f32 %v2105_v1, %v6104_v63 }
 0x26d   : > { %v2363_v47 = vpop.f32.mrf.mxu0  ;;  %v4582_v29 = vpop.f32.mrf.mxu1 }
 0x26e   : > { %v6242_v10 = vadd.f32 %v2363_v47, %v2172_v16  ;;  %v6245_v36 = vadd.f32 %v4582_v29, %v6107_v55 }
 0x26f   : > { %v6247_v8 = vpop.f32.mrf.mxu0  ;;  %v2108_v38 = vpop.f32.mrf.mxu1 }
 0x270   : > { %6612 = vst [vmem:[#allocation2_spill] sm:$0xff] %v6245_v36  ;;  %6613 = vst [vmem:[#allocation3_spill] sm:$0xff] %v6247_v8  ;;  %v6250_v39 = vadd.f32 %v2108_v38, %v6115_v44 }
 0x271   : > { %v6252_v33 = vpop.f32.mrf.mxu0  ;;  %v4585_v27 = vpop.f32.mrf.mxu1 }
 0x272   : > { %6614 = vst [vmem:[#allocation4_spill] sm:$0xff] %v6250_v39  ;;  %6615 = vst [vmem:[#allocation5_spill] sm:$0xff] %v6252_v33  ;;  %v2178_v35 = vadd.f32 %v4585_v27, %v6119_v17 }
 0x273   : > { %v4633_v41 = vpop.f32.mrf.mxu0  ;;  %v2121_v63 = vpop.f32.mrf.mxu1 }
 0x274   : > { %v6255_v15 = vadd.f32 %v4633_v41, %v2178_v35  ;;  %v2176_v24 = vadd.f32 %v2121_v63, %v6123_v51 }
 0x275   : > { %v2379_v34 = vpop.f32.mrf.mxu0  ;;  %v4586_v55 = vpop.f32.mrf.mxu1 }
 0x276   : > { %v6258_v31 = vadd.f32 %v2379_v34, %v2176_v24  ;;  %v6261_v58 = vadd.f32 %v4586_v55, %v6126_v26 }
 0x277   : > { %v6263_v44 = vpop.f32.mrf.mxu0  ;;  %v2124_v61 = vpop.f32.mrf.mxu1 }
 0x278   : > { %6616 = vst [vmem:[#allocation6_spill] sm:$0xff] %v6261_v58  ;;  %6617 = vst [vmem:[#allocation7_spill] sm:$0xff] %v6263_v44  ;;  %v6266_v37 = vadd.f32 %v2124_v61, %v6134_v2 }
 0x279   : > { %v6268_v17 = vpop.f32.mrf.mxu0  ;;  %v4589_v46 = vpop.f32.mrf.mxu1 }
 0x27a   : > { %6618 = vst [vmem:[#allocation8_spill] sm:$0xff] %v6266_v37  ;;  %6619 = vst [vmem:[#allocation9_spill] sm:$0xff] %v6268_v17  ;;  %v2182_v60 = vadd.f32 %v4589_v46, %v6137_v50 }
 0x27b   : > { %v4637_v1 = vpop.f32.mrf.mxu0  ;;  %v2137_v51 = vpop.f32.mrf.mxu1 }
 0x27c   : > { %v6271_v16 = vadd.f32 %v4637_v1, %v2182_v60  ;;  %v2180_v47 = vadd.f32 %v2137_v51, %v6141_v20 }
 0x27d   : > { %v2395_v29 = vpop.f32.mrf.mxu0  ;;  %v4590_v26 = vpop.f32.mrf.mxu1 }
 0x27e   : > { %v6274_v38 = vadd.f32 %v2395_v29, %v2180_v47  ;;  %v6277_v27 = vadd.f32 %v4590_v26, %v6144_v18 }
 0x27f   : > { %v6279_v2 = vpop.f32.mrf.mxu0  ;;  %v2140_v35 = vpop.f32.mrf.mxu1 }
 0x280   : > { %6620 = vst [vmem:[#allocation10_spill] sm:$0xff] %v6277_v27  ;;  %6621 = vst [vmem:[#allocation11_spill] sm:$0xff] %v6279_v2  ;;  %v6282_v41 = vadd.f32 %v2140_v35, %v6149_v5 }
 0x281   : > { %v6284_v50 = vpop.f32.mrf.mxu0  ;;  %v4657_v63 = vpop.f32.mrf.mxu1 }
 0x282   : > { %6622 = vst [vmem:[#allocation12_spill] sm:$0xff] %v6282_v41  ;;  %6623 = vst [vmem:[#allocation13_spill] sm:$0xff] %v6284_v50  ;;  %v6287_v24 = vadd.f32 %v4657_v63, %v6152_v57 }
 0x283   : > { %v6289_v20 = vpop.f32.mrf.mxu0  ;;  %v2612_v34 = vpop.f32.mrf.mxu1 }
 0x284   : > { %v6292_v55 = vadd.f32 %v2612_v34, %v6157_v45 }
 0x285   : > { %v6294_v18 = vpop.f32.mrf.mxu0  ;;  %v4658_v61 = vpop.f32.mrf.mxu1 }
 0x287   : > { %v6296_v46 = vpop.f32.mrf.mxu0  ;;  %v2615_v60 = vpop.f32.mrf.mxu1 }
 0x289   : > { %v4661_v5 = vpop.f32.mrf.mxu1  ;;  %v6301_v51 = vpop.f32.mrf.mxu0 }
 0x28a   : > { %v6299_v1 = vadd.f32 %v4661_v5, %v6172_v54 }
 0x28b   : > { %v2628_v57 = vpop.f32.mrf.mxu1  ;;  %v6308_v45 = vpop.f32.mrf.mxu0 }
 0x28c   : > { %v6304_v47 = vadd.f32 %v2628_v57, %v6177_v6 }
 0x28d   : > { %v6306_v29 = vpop.f32.mrf.mxu1  ;;  %v6315_v34 = vpop.f32.mrf.mxu0 }
 0x28f   : > { %v6310_v26 = vpop.f32.mrf.mxu1  ;;  %v6322_v6 = vpop.f32.mrf.mxu0 }
 0x291   : > { %v4665_v35 = vpop.f32.mrf.mxu1  ;;  %v6329_v27 = vpop.f32.mrf.mxu0 }
 0x292   : > { %v6313_v63 = vadd.f32 %v4665_v35, %v6189_v14 }
 0x293   : > { %v2644_v54 = vpop.f32.mrf.mxu1 }
 0x294   : > { %v6318_v5 = vadd.f32 %v2644_v54, %v6194_v62  ;;  %v6336_v62 = vpop.f32.mrf.mxu0 }
 0x295   : > { %v6320_v50 = vpop.f32.mrf.mxu1 }
 0x296   : > { %v6343_v58 = vpop.f32.mrf.mxu0 }
 0x297   : > { %v6324_v57 = vpop.f32.mrf.mxu1 }
 0x299   : > { %v4669_v41 = vpop.f32.mrf.mxu1 }
 0x29a   : > { %v6327_v2 = vadd.f32 %v4669_v41, %v6206_v12 }
 0x29b   : > { %v2660_v14 = vpop.f32.mrf.mxu1 }
 0x29c   : > { %v6332_v35 = vadd.f32 %v2660_v14, %v6211_v23  ;;  %v6350_v23 = vpop.f32.mrf.mxu0 }
 0x29d   : > { %v6334_v17 = vpop.f32.mrf.mxu1 }
 0x29e   : > { %v6357_v36 = vpop.f32.mrf.mxu0 }
 0x29f   : > { %v6338_v54 = vpop.f32.mrf.mxu1 }
 0x2a1   : > { %v4673_v37 = vpop.f32.mrf.mxu1 }
 0x2a2   : > { %v6341_v44 = vadd.f32 %v4673_v37, %v6223_v28 }
 0x2a3   : > { %v2676_v12 = vpop.f32.mrf.mxu1 }
 0x2a4   : > { %6624 = vst [vmem:[#allocation14_spill] sm:$0xff] %v6341_v44  ;;  %v6346_v41 = vadd.f32 %v2676_v12, %v6226_v32  ;;  %v6364_v32 = vpop.f32.mrf.mxu0 }
 0x2a5   : > { %v6348_v33 = vpop.f32.mrf.mxu1 }
 0x2a6   : > { %6625 = vst [vmem:[#allocation15_spill] sm:$0xff] %v6346_v41  ;;  %6626 = vst [vmem:[#allocation16_spill] sm:$0xff] %v6348_v33 }
 0x2a7   : > { %v6352_v14 = vpop.f32.mrf.mxu1 }
 0x2a8   : > { %6627 = vst [vmem:[#allocation17_spill] sm:$0xff] %v6352_v14  ;;  %v6371_v14 = vpop.f32.mrf.mxu0 }
 0x2a9   : > { %v4677_v39 = vpop.f32.mrf.mxu1 }
 0x2aa   : > { %v6355_v8 = vadd.f32 %v4677_v39, %v6239_v42 }
 0x2ab   : > { %v2692_v28 = vpop.f32.mrf.mxu1 }
 0x2ac   : > { %6628 = vst [vmem:[#allocation18_spill] sm:$0xff] %v6355_v8  ;;  %v6360_v37 = vadd.f32 %v2692_v28, %v6242_v10  ;;  %v6378_v10 = vpop.f32.mrf.mxu0 }
 0x2ad   : > { %v6362_v44 = vpop.f32.mrf.mxu1 }
 0x2ae   : > { %6629 = vst [vmem:[#allocation19_spill] sm:$0xff] %v6360_v37  ;;  %6630 = vst [vmem:[#allocation20_spill] sm:$0xff] %v6362_v44 }
 0x2af   : > { %v6366_v12 = vpop.f32.mrf.mxu1 }
 0x2b0   : > { %6631 = vst [vmem:[#allocation21_spill] sm:$0xff] %v6366_v12  ;;  %v6385_v12 = vpop.f32.mrf.mxu0 }
 0x2b1   : > { %v4681_v41 = vpop.f32.mrf.mxu1 }
 0x2b2   : > { %v6369_v33 = vadd.f32 %v4681_v41, %v6255_v15 }
 0x2b3   : > { %v2708_v42 = vpop.f32.mrf.mxu1 }
 0x2b4   : > { %6632 = vst [vmem:[#allocation22_spill] sm:$0xff] %v6369_v33  ;;  %v6374_v39 = vadd.f32 %v2708_v42, %v6258_v31  ;;  %v2413_v31 = vadd.f32 %v6162_v48, %v6160_v43  ;;  %v6394_v42 = vpop.f32.mrf.mxu0 }
 0x2b5   : > { %v6376_v8 = vpop.f32.mrf.mxu1 }
 0x2b6   : > { %6633 = vst [vmem:[#allocation23_spill] sm:$0xff] %v6374_v39  ;;  %6634 = vst [vmem:[#allocation24_spill] sm:$0xff] %v6376_v8 }
 0x2b7   : > { %v6380_v28 = vpop.f32.mrf.mxu1 }
 0x2b8   : > { %6635 = vst [vmem:[#allocation25_spill] sm:$0xff] %v6380_v28  ;;  %v2411_v28 = vadd.f32 %v6166_v9, %v6164_v56 }
 0x2b9   : > { %v4685_v37 = vpop.f32.mrf.mxu1 }
 0x2ba   : > { %v6383_v44 = vadd.f32 %v4685_v37, %v6271_v16  ;;  %v2742_v16 = vadd.f32 %v4658_v61, %v2413_v31  ;;  %v2740_v8 = vadd.f32 %v2615_v60, %v2411_v28 }
 0x2bb   : > { %v2724_v15 = vpop.f32.mrf.mxu1 }
 0x2bc   : > { %6636 = vst [vmem:[#allocation26_spill] sm:$0xff] %v6383_v44  ;;  %v6388_v41 = vadd.f32 %v2724_v15, %v6274_v38  ;;  %v2999_v44 = vadd.f32 %v6289_v20, %v6287_v24  ;;  %v6402_v38 = vpop.f32.mrf.mxu0  ;;  %v3000_v43 = vadd.f32 %v6296_v46, %v2742_v16  ;;  %v2998_v56 = vadd.f32 %v6301_v51, %v2740_v8 }
 0x2bd   : > { %v6390_v33 = vpop.f32.mrf.mxu1  ;;  %v2415_v24 = vadd.f32 %v6186_v21, %v6184_v0  ;;  %v3001_v21 = vadd.f32 %v6315_v34, %v6304_v47 }
 0x2be   : > { %6637 = vst [vmem:[#allocation27_spill] sm:$0xff] %v6388_v41  ;;  %6638 = vst [vmem:[#allocation28_spill] sm:$0xff] %v6390_v33  ;;  %v2997_v41 = vadd.f32 %v6294_v18, %v6292_v55  ;;  %v6412_v20 = vpop.f32.mrf.mxu0 }
 0x2bf   : > { %v6396_v39 = vpop.f32.mrf.mxu1 }
 0x2c0   : > { %6639 = vst [vmem:[#allocation29_spill] sm:$0xff] %v6396_v39  ;;  %v2417_v39 = vadd.f32 %v6182_v19, %v6180_v22  ;;  %v2744_v22 = vadd.f32 %v6310_v26, %v2415_v24  ;;  %v6418_v51 = vpop.f32.mrf.mxu0 }
 0x2c1   : > { %v4753_v37 = vpop.f32.mrf.mxu1 }
 0x2c2   : > { %v3257_v48 = vadd.f32 %v4753_v37, %v2999_v44  ;;  %v2746_v28 = vadd.f32 %v6306_v29, %v2417_v39  ;;  %v3003_v44 = vadd.f32 %v6308_v45, %v6299_v1  ;;  %v2421_v1 = vadd.f32 %v6199_v30, %v6197_v25 }
 0x2c3   : > { %v3128_v15 = vpop.f32.mrf.mxu1  ;;  %v3002_v45 = vadd.f32 %v6329_v27, %v2744_v22  ;;  %v3007_v25 = vadd.f32 %v6336_v62, %v6313_v63  ;;  %v2425_v63 = vadd.f32 %v6216_v59, %v6214_v3  ;;  %v3011_v3 = vadd.f32 %v6364_v32, %v6327_v2 }
 0x2c4   : > { %v3255_v9 = vadd.f32 %v3128_v15, %v2997_v41  ;;  %v3289_v55 = vmax.f32 %v3257_v48, 0.0  ;;  %v3004_v29 = vadd.f32 %v6322_v6, %v2746_v28  ;;  %v2419_v15 = vadd.f32 %v6203_v49, %v6201_v7 }
 0x2c5   : > { %v4754_v33 = vpop.f32.mrf.mxu1  ;;  %v2750_v47 = vadd.f32 %v6320_v50, %v2421_v1  ;;  %v3005_v49 = vadd.f32 %v6343_v58, %v6318_v5  ;;  %v2754_v58 = vadd.f32 %v6334_v17, %v2425_v63  ;;  %v2427_v1 = vadd.f32 %v6236_v52, %v6234_v4  ;;  %v6643_v4 = vld [vmem:[#allocation15_spill] sm:$0xff]  ;;  %v6647_v63 = vld [vmem:[#allocation5_spill] sm:$0xff] }
 0x2c6   : > { %v3258_v61 = vadd.f32 %v4754_v33, %v3000_v43  ;;  %v3287_v19 = vmax.f32 %v3255_v9, 0.0  ;;  %v6428_v43 = vpop.f32.mrf.mxu0  ;;  %v2748_v27 = vadd.f32 %v6324_v57, %v2419_v15  ;;  %v3013_v52 = vadd.f32 %v6402_v38, %v6643_v4  ;;  %v6648_v38 = vld [vmem:[#allocation20_spill] sm:$0xff] }
 0x2c7   : > { %v3131_v60 = vpop.f32.mrf.mxu1  ;;  %v3008_v50 = vadd.f32 %v6350_v23, %v2750_v47 }
 0x2c8   : > { %v3290_v18 = vmax.f32 %v3258_v61, 0.0  ;;  %v3256_v46 = vadd.f32 %v3131_v60, %v2998_v56  ;;  %v6434_v60 = vpop.f32.mrf.mxu0  ;;  %v3006_v62 = vadd.f32 %v6357_v36, %v2748_v27 }
 0x2c9   : > { %v4757_v31 = vpop.f32.mrf.mxu1 }
 0x2ca   : > { %v3320_v8 = vpack.c.bf16 %v3290_v18, %v3289_v55  ;;  %v3288_v33 = vmax.f32 %v3256_v46, 0.0  ;;  %v3261_v41 = vadd.f32 %v4757_v31, %v3003_v44  ;;  %v2423_v44 = vadd.f32 %v6220_v13, %v6218_v40  ;;  %v6444_v31 = vpop.f32.mrf.mxu0 }
 0x2cb   : > { %v3144_v0 = vpop.f32.mrf.mxu1  ;;  %v3009_v13 = vadd.f32 %v6371_v14, %v6332_v35  ;;  %v6640_v35 = vld [vmem:[#allocation16_spill] sm:$0xff] }
 0x2cc   : > { %v3319_v39 = vpack.c.bf16 %v3288_v33, %v3287_v19  ;;  %v3259_v26 = vadd.f32 %v3144_v0, %v3001_v21  ;;  %v3293_v34 = vmax.f32 %v3261_v41, 0.0  ;;  %v2752_v36 = vadd.f32 %v6338_v54, %v2423_v44  ;;  %v2953_v21 = vpop.f32.mrf.mxu0 }
 0x2cd   : > { %v4758_v16 = vpop.f32.mrf.mxu1 }
 0x2ce   : > { %v3262_v37 = vadd.f32 %v4758_v16, %v3004_v29  ;;  %4799 = vmatprep.mubr.bf16.mxu0 %v3319_v39  ;;  %v3291_v9 = vmax.f32 %v3259_v26, 0.0  ;;  %v3012_v29 = vadd.f32 %v6378_v10, %v2754_v58  ;;  %v2429_v16 = vadd.f32 %v6231_v53, %v6229_v11  ;;  %v6642_v53 = vld [vmem:[#allocation17_spill] sm:$0xff] }
 0x2cf   : > { %v3147_v48 = vpop.f32.mrf.mxu1  ;;  %4800 = vmatmul.mubr.bf16.vlgmr.msra.gmra.mxu0 %v3320_v8  ;;  %v3010_v2 = vadd.f32 %v6385_v12, %v2752_v36  ;;  %v2756_v12 = vadd.f32 %v6642_v53, %v2427_v1 }
 0x2d0   : > { %v3294_v6 = vmax.f32 %v3262_v37, 0.0  ;;  %v3260_v56 = vadd.f32 %v3147_v48, %v3002_v45  ;;  %v4729_v45 = vpop.f32.mrf.mxu0  ;;  %v2758_v14 = vadd.f32 %v6640_v35, %v2429_v16  ;;  %v6641_v48 = vld [vmem:[#allocation14_spill] sm:$0xff]  ;;  %v6655_v35 = vld [vmem:[#allocation9_spill] sm:$0xff] }
 0x2d1   : > { %v4761_v30 = vpop.f32.mrf.mxu1  ;;  %v3015_v47 = vadd.f32 %v6394_v42, %v6641_v48  ;;  %v3014_v42 = vadd.f32 %v6418_v51, %v2756_v12  ;;  %v6652_v16 = vld [vmem:[#allocation6_spill] sm:$0xff] }
 0x2d2   : > { %v3322_v61 = vpack.c.bf16 %v3294_v6, %v3293_v34  ;;  %v3292_v24 = vmax.f32 %v3260_v56, 0.0  ;;  %v3265_v55 = vadd.f32 %v4761_v30, %v3007_v25  ;;  %v2966_v25 = vpop.f32.mrf.mxu0  ;;  %v3016_v27 = vadd.f32 %v6412_v20, %v2758_v14 }
 0x2d3   : > { %v3160_v7 = vpop.f32.mrf.mxu1 }
 0x2d4   : > { %v3321_v28 = vpack.c.bf16 %v3292_v24, %v3291_v9  ;;  %v3263_v57 = vadd.f32 %v3160_v7, %v3005_v49  ;;  %v3297_v5 = vmax.f32 %v3265_v55, 0.0  ;;  %v6644_v7 = vld [vmem:[#allocation2_spill] sm:$0xff]  ;;  %v6645_v49 = vld [vmem:[#allocation3_spill] sm:$0xff] }
 0x2d5   : > { %v4762_v18 = vpop.f32.mrf.mxu1 }
 0x2d6   : > { %v3266_v46 = vadd.f32 %v4762_v18, %v3008_v50  ;;  %4803 = vmatprep.mubr.bf16.mxu0 %v3321_v28  ;;  %v3295_v8 = vmax.f32 %v3263_v57, 0.0  ;;  %v2433_v50 = vadd.f32 %v6645_v49, %v6644_v7  ;;  %v6646_v18 = vld [vmem:[#allocation4_spill] sm:$0xff]  ;;  %v4730_v57 = vpop.f32.mrf.mxu0 }
 0x2d7   : > { %v3163_v22 = vpop.f32.mrf.mxu1  ;;  %4804 = vmatmul.mubr.bf16.gmra.mxu0 %v3322_v61 }
 0x2d8   : > { %v3298_v23 = vmax.f32 %v3266_v46, 0.0  ;;  %v3264_v19 = vadd.f32 %v3163_v22, %v3006_v62  ;;  %v2431_v62 = vadd.f32 %v6647_v63, %v6646_v18  ;;  %v2762_v44 = vadd.f32 %v6648_v38, %v2433_v50  ;;  %v6660_v50 = vld [vmem:[#allocation10_spill] sm:$0xff]  ;;  %v6662_v63 = vld [vmem:[#allocation12_spill] sm:$0xff] }
 0x2d9   : > { %v4765_v59 = vpop.f32.mrf.mxu1 }
 0x2da   : > { %v3324_v33 = vpack.c.bf16 %v3298_v23, %v3297_v5  ;;  %v3296_v0 = vmax.f32 %v3264_v19, 0.0  ;;  %v3269_v39 = vadd.f32 %v4765_v59, %v3011_v3  ;;  %v6649_v5 = vld [vmem:[#allocation18_spill] sm:$0xff]  ;;  %v6650_v3 = vld [vmem:[#allocation21_spill] sm:$0xff] }
 0x2db   : > { %v3176_v40 = vpop.f32.mrf.mxu1  ;;  %v3019_v23 = vadd.f32 %v6428_v43, %v6649_v5  ;;  %v2760_v51 = vadd.f32 %v6650_v3, %v2431_v62  ;;  %v6663_v62 = vld [vmem:[#allocation13_spill] sm:$0xff]  ;;  %v6665_v5 = vld [vmem:[#allocation26_spill] sm:$0xff] }
 0x2dc   : > { %v3323_v17 = vpack.c.bf16 %v3296_v0, %v3295_v8  ;;  %v3267_v32 = vadd.f32 %v3176_v40, %v3009_v13  ;;  %v3301_v10 = vmax.f32 %v3269_v39, 0.0  ;;  %v6651_v40 = vld [vmem:[#allocation19_spill] sm:$0xff]  ;;  %v6666_v3 = vld [vmem:[#allocation29_spill] sm:$0xff] }
 0x2dd   : > { %v4766_v41 = vpop.f32.mrf.mxu1  ;;  %v3017_v13 = vadd.f32 %v6434_v60, %v6651_v40  ;;  %v3018_v43 = vadd.f32 %v2953_v21, %v2760_v51  ;;  %v6667_v40 = vld [vmem:[#allocation27_spill] sm:$0xff] }
 0x2de   : > { %v3270_v54 = vadd.f32 %v4766_v41, %v3012_v29  ;;  %4807 = vmatprep.mubr.bf16.mxu0 %v3323_v17  ;;  %v3299_v34 = vmax.f32 %v3267_v32, 0.0  ;;  %v3020_v29 = vadd.f32 %v6444_v31, %v2762_v44 }
 0x2df   : > { %v3179_v26 = vpop.f32.mrf.mxu1  ;;  %4808 = vmatmul.mubr.bf16.gmra.mxu0 %v3324_v33  ;;  %v2969_v33 = vpop.f32.mrf.mxu0 }
 0x2e0   : > { %v3302_v37 = vmax.f32 %v3270_v54, 0.0  ;;  %v3268_v15 = vadd.f32 %v3179_v26, %v3010_v2  ;;  %v6653_v2 = vld [vmem:[#allocation7_spill] sm:$0xff]  ;;  %v6654_v26 = vld [vmem:[#allocation8_spill] sm:$0xff] }
 0x2e1   : > { %v4769_v11 = vpop.f32.mrf.mxu1  ;;  %v2437_v32 = vadd.f32 %v6653_v2, %v6652_v16  ;;  %v2435_v14 = vadd.f32 %v6655_v35, %v6654_v26 }
 0x2e2   : > { %v3326_v6 = vpack.c.bf16 %v3302_v37, %v3301_v10  ;;  %v3300_v56 = vmax.f32 %v3268_v15, 0.0  ;;  %v3273_v61 = vadd.f32 %v4769_v11, %v3015_v47  ;;  %v4733_v10 = vpop.f32.mrf.mxu0  ;;  %v6656_v15 = vld [vmem:[#allocation24_spill] sm:$0xff]  ;;  %v6657_v11 = vld [vmem:[#allocation22_spill] sm:$0xff] }
 0x2e3   : > { %v3192_v30 = vpop.f32.mrf.mxu1  ;;  %v2766_v60 = vadd.f32 %v6656_v15, %v2437_v32  ;;  %v3023_v53 = vadd.f32 %v4729_v45, %v6657_v11  ;;  %v6496_v15 = vld [vmem:[%s6599_s6] ss:$0 sm:$0xff] }
 0x2e4   : > { %v3325_v9 = vpack.c.bf16 %v3300_v56, %v3299_v34  ;;  %v3271_v28 = vadd.f32 %v3192_v30, %v3013_v52  ;;  %v3305_v20 = vmax.f32 %v3273_v61, 0.0  ;;  %v6658_v34 = vld [vmem:[#allocation25_spill] sm:$0xff]  ;;  %v2982_v4 = vpop.f32.mrf.mxu0 }
 0x2e5   : > { %v4770_v24 = vpop.f32.mrf.mxu1  ;;  %v3024_v61 = vadd.f32 %v4730_v57, %v2766_v60  ;;  %v4992_v60 = vld [vmem:[%s5106_s14 + $0x8] sm:$0xff]  }
 0x2e6   : > { %v3274_v55 = vadd.f32 %v4770_v24, %v3016_v27  ;;  %4811 = vmatprep.mubr.bf16.mxu0 %v3325_v9  ;;  %v3303_v59 = vmax.f32 %v3271_v28, 0.0  ;;  %v6659_v27 = vld [vmem:[#allocation23_spill] sm:$0xff]  ;;  %v4734_v38 = vpop.f32.mrf.mxu0 }
 0x2e7   : > { %v3195_v46 = vpop.f32.mrf.mxu1  ;;  %4812 = vmatmul.mubr.bf16.gmra.mxu0 %v3326_v6  ;;  %v2764_v6 = vadd.f32 %v6658_v34, %v2435_v14  ;;  %v3021_v9 = vadd.f32 %v2966_v25, %v6659_v27 }
 0x2e8   : > { %v3306_v22 = vmax.f32 %v3274_v55, 0.0  ;;  %v3272_v58 = vadd.f32 %v3195_v46, %v3014_v42  ;;  %v6661_v42 = vld [vmem:[#allocation11_spill] sm:$0xff]  ;;  %v2439_v46 = vadd.f32 %v6663_v62, %v6662_v63 }
 0x2e9   : > { %v4773_v19 = vpop.f32.mrf.mxu1  ;;  %v2441_v28 = vadd.f32 %v6661_v42, %v6660_v50  ;;  %v3022_v55 = vadd.f32 %v2969_v33, %v2764_v6  ;;  %v2985_v33 = vpop.f32.mrf.mxu0 }
 0x2ea   : > { %v3328_v36 = vpack.c.bf16 %v3306_v22, %v3305_v20  ;;  %v3304_v8 = vmax.f32 %v3272_v58, 0.0  ;;  %v3277_v39 = vadd.f32 %v4773_v19, %v3019_v23  ;;  %v6664_v20 = vld [vmem:[#allocation28_spill] sm:$0xff]  ;;  %v3027_v23 = vadd.f32 %v4733_v10, %v6665_v5 }
 0x2eb   : > { %v3208_v0 = vpop.f32.mrf.mxu1  ;;  %v2770_v22 = vadd.f32 %v6664_v20, %v2441_v28  ;;  %v2768_v51 = vadd.f32 %v6666_v3, %v2439_v46 }
 0x2ec   : > { %v3327_v17 = vpack.c.bf16 %v3304_v8, %v3303_v59  ;;  %v3275_v54 = vadd.f32 %v3208_v0, %v3017_v13  ;;  %v3309_v48 = vmax.f32 %v3277_v39, 0.0  ;;  %v3025_v13 = vadd.f32 %v2982_v4, %v6667_v40 }
 0x2ed   : > { %v4774_v41 = vpop.f32.mrf.mxu1  ;;  %v3026_v16 = vadd.f32 %v2985_v33, %v2768_v51 }
 0x2ee   : > { %v3278_v1 = vadd.f32 %v4774_v41, %v3020_v29  ;;  %4815 = vmatprep.mubr.bf16.mxu0 %v3327_v17  ;;  %v3307_v21 = vmax.f32 %v3275_v54, 0.0  ;;  %v3028_v29 = vadd.f32 %v4734_v38, %v2770_v22 }
 0x2ef   : > { %v3211_v37 = vpop.f32.mrf.mxu1  ;;  %4816 = vmatmul.mubr.bf16.gmra.mxu0 %v3328_v36 }
 0x2f0   : > { %v3310_v31 = vmax.f32 %v3278_v1, 0.0  ;;  %v3276_v47 = vadd.f32 %v3211_v37, %v3018_v43 }
 0x2f1   : > { %v4777_v12 = vpop.f32.mrf.mxu1 }
 0x2f2   : > { %v3330_v56 = vpack.c.bf16 %v3310_v31, %v3309_v48  ;;  %v3308_v30 = vmax.f32 %v3276_v47, 0.0  ;;  %v3281_v7 = vadd.f32 %v4777_v12, %v3023_v53  ;;  %v3569_v48 = vunpack.c.l.bf16 %v4992_v60  ;;  %v4993_v47 = vld [vmem:[%s5106_s14] sm:$0xff]  }
 0x2f3   : > { %v3224_v52 = vpop.f32.mrf.mxu1  ;;  %v3567_v11 = vunpack.c.l.bf16 %v4993_v47 }
 0x2f4   : > { %v3329_v24 = vpack.c.bf16 %v3308_v30, %v3307_v21  ;;  %v3279_v18 = vadd.f32 %v3224_v52, %v3021_v9  ;;  %v3313_v25 = vmax.f32 %v3281_v7, 0.0  ;;  %v3570_v21 = vunpack.c.h.bf16 %v4992_v60  ;;  %v4998_v60 = vld [vmem:[%s5106_s14 + $0x38] sm:$0xff]  }
 0x2f5   : > { %v4778_v49 = vpop.f32.mrf.mxu1  ;;  %v3568_v30 = vunpack.c.h.bf16 %v4993_v47 }
 0x2f6   : > { %v3282_v45 = vadd.f32 %v4778_v49, %v3024_v61  ;;  %4819 = vmatprep.mubr.bf16.mxu0 %v3329_v24  ;;  %v3311_v59 = vmax.f32 %v3279_v18, 0.0  ;;  %v4994_v49 = vld [vmem:[%s5106_s14 + $0x18] sm:$0xff]  }
 0x2f7   : > { %v3227_v44 = vpop.f32.mrf.mxu1  ;;  %4820 = vmatmul.mubr.bf16.gmra.mxu0 %v3330_v56  ;;  %v3573_v50 = vunpack.c.l.bf16 %v4994_v49  ;;  %v3574_v20 = vunpack.c.h.bf16 %v4994_v49 }
 0x2f8   : > { %v3314_v57 = vmax.f32 %v3282_v45, 0.0  ;;  %v3280_v58 = vadd.f32 %v3227_v44, %v3022_v55  ;;  %v4995_v45 = vld [vmem:[%s5106_s14 + $0x10] sm:$0xff]  }
 0x2f9   : > { %v4781_v19 = vpop.f32.mrf.mxu1  ;;  %v3571_v63 = vunpack.c.l.bf16 %v4995_v45  ;;  %v3572_v5 = vunpack.c.h.bf16 %v4995_v45  ;;  %v5001_v45 = vld [vmem:[%s5106_s14 + $0x40] sm:$0xff]  }
 0x2fa   : > { %v3332_v36 = vpack.c.bf16 %v3314_v57, %v3313_v25  ;;  %v3312_v8 = vmax.f32 %v3280_v58, 0.0  ;;  %v3285_v39 = vadd.f32 %v4781_v19, %v3027_v23 }
 0x2fb   : > { %v3240_v0 = vpop.f32.mrf.mxu1 }
 0x2fc   : > { %v3331_v17 = vpack.c.bf16 %v3312_v8, %v3311_v59  ;;  %v3283_v2 = vadd.f32 %v3240_v0, %v3025_v13  ;;  %v3317_v54 = vmax.f32 %v3285_v39, 0.0  ;;  %v4996_v59 = vld [vmem:[%s5106_s14 + $0x28] sm:$0xff]   ;;  %v4997_v13 = vld [vmem:[%s5106_s14 + $0x20] sm:$0xff]  }
 0x2fd   : > { %v4782_v41 = vpop.f32.mrf.mxu1 }
 0x2fe   : > { %v3286_v32 = vadd.f32 %v4782_v41, %v3028_v29  ;;  %4823 = vmatprep.mubr.bf16.mxu0 %v3331_v17  ;;  %v3315_v35 = vmax.f32 %v3283_v2, 0.0  ;;  %v3575_v29 = vunpack.c.l.bf16 %v4997_v13  ;;  %v3578_v2 = vunpack.c.h.bf16 %v4996_v59 }
 0x2ff   : > { %v3243_v43 = vpop.f32.mrf.mxu1  ;;  %4824 = vmatmul.mubr.bf16.gmra.mxu0 %v3332_v36  ;;  %v3577_v36 = vunpack.c.l.bf16 %v4996_v59 }
 0x300   : > { %v3318_v1 = vmax.f32 %v3286_v32, 0.0  ;;  %v3284_v26 = vadd.f32 %v3243_v43, %v3026_v16 }
 0x302   : > { %v3334_v14 = vpack.c.bf16 %v3318_v1, %v3317_v54  ;;  %v3316_v10 = vmax.f32 %v3284_v26, 0.0  ;;  %v3576_v26 = vunpack.c.h.bf16 %v4997_v13 }
 0x304   : > { %v3333_v37 = vpack.c.bf16 %v3316_v10, %v3315_v35 }
 0x306   : > { %4827 = vmatprep.mubr.bf16.mxu0 %v3333_v37 }
 0x307   : > { %4828 = vmatmul.mubr.bf16.gmra.mxu0 %v3334_v14 }
 0x38f   : > { %v4801_v31 = vpop.f32.mrf.mxu0 }
 0x390   : > { %v3449_v53 = vadd.f32 %v4801_v31, %v6496_v15 }
 0x391   : > { %v3440_v12 = vpop.f32.mrf.mxu0 }
 0x392   : > { %v3601_v34 = vadd.f32 %v3569_v48, %v3449_v53  ;;  %v3441_v6 = vadd.f32 %v6496_v15, %v3440_v12  ;;  %v3581_v48 = vunpack.c.l.bf16 %v4998_v60  ;;  %v4999_v12 = vld [vmem:[%s5106_s14 + $0x30] sm:$0xff]  }
 0x393   : > { %v4802_v56 = vpop.f32.mrf.mxu0 }
 0x394   : > { %v3633_v4 = vmax.f32 %v3601_v34, 0.0  ;;  %v3599_v52 = vadd.f32 %v3567_v11, %v3441_v6  ;;  %v3452_v27 = vadd.f32 %v4802_v56, %v6496_v15  ;;  %v3579_v34 = vunpack.c.l.bf16 %v4999_v12 }
 0x395   : > { %v3443_v9 = vpop.f32.mrf.mxu0 }
 0x396   : > { %3665 = vst [vmem:[%s6506_s13 + $0x10] sm:$0xff] %v3633_v4  ;;  %v3631_v61 = vmax.f32 %v3599_v52, 0.0  ;;  %v3602_v24 = vadd.f32 %v3570_v21, %v3452_v27  ;;  %v3444_v7 = vadd.f32 %v6496_v15, %v3443_v9  ;;  %v3582_v4 = vunpack.c.h.bf16 %v4998_v60 }
 0x397   : > { %v4805_v42 = vpop.f32.mrf.mxu0 }
 0x398   : > { %3663 = vst [vmem:[%s6506_s13] sm:$0xff] %v3631_v61  ;;  %v3634_v28 = vmax.f32 %v3602_v24, 0.0  ;;  %v3600_v55 = vadd.f32 %v3568_v30, %v3444_v7  ;;  %v3465_v18 = vadd.f32 %v4805_v42, %v6496_v15  ;;  %v3580_v24 = vunpack.c.h.bf16 %v4999_v12 }
 0x399   : > { %v3456_v62 = vpop.f32.mrf.mxu0 }
 0x39a   : > { %3666 = vst [vmem:[%s6506_s13 + $0x18] sm:$0xff] %v3634_v28  ;;  %v3632_v46 = vmax.f32 %v3600_v55, 0.0  ;;  %v3605_v38 = vadd.f32 %v3573_v50, %v3465_v18  ;;  %v3457_v44 = vadd.f32 %v6496_v15, %v3456_v62  ;;  %v5000_v28 = vld [vmem:[%s5106_s14 + $0x48] sm:$0xff]  }
 0x39b   : > { %v4806_v22 = vpop.f32.mrf.mxu0  ;;  %v3585_v55 = vunpack.c.l.bf16 %v5000_v28 }
 0x39c   : > { %3664 = vst [vmem:[%s6506_s13 + $0x8] sm:$0xff] %v3632_v46  ;;  %v3637_v25 = vmax.f32 %v3605_v38, 0.0  ;;  %v3603_v57 = vadd.f32 %v3571_v63, %v3457_v44  ;;  %v3468_v58 = vadd.f32 %v4806_v22, %v6496_v15  ;;  %v3583_v63 = vunpack.c.l.bf16 %v5001_v45 }
 0x39d   : > { %v3459_v23 = vpop.f32.mrf.mxu0 }
 0x39e   : > { %3669 = vst [vmem:[%s6506_s13 + $0x30] sm:$0xff] %v3637_v25  ;;  %v3635_v19 = vmax.f32 %v3603_v57, 0.0  ;;  %v3606_v3 = vadd.f32 %v3574_v20, %v3468_v58  ;;  %v3460_v51 = vadd.f32 %v6496_v15, %v3459_v23  ;;  %v3586_v57 = vunpack.c.h.bf16 %v5000_v28 }
 0x39f   : > { %v4809_v8 = vpop.f32.mrf.mxu0 }
 0x3a0   : > { %3667 = vst [vmem:[%s6506_s13 + $0x20] sm:$0xff] %v3635_v19  ;;  %v3638_v33 = vmax.f32 %v3606_v3, 0.0  ;;  %v3604_v0 = vadd.f32 %v3572_v5, %v3460_v51  ;;  %v3481_v40 = vadd.f32 %v4809_v8, %v6496_v15  ;;  %v3584_v5 = vunpack.c.h.bf16 %v5001_v45  ;;  %v5006_v45 = vld [vmem:[%s5106_s14 + $0x78] sm:$0xff]  }
 0x3a1   : > { %v3472_v17 = vpop.f32.mrf.mxu0 }
 0x3a2   : > { %3670 = vst [vmem:[%s6506_s13 + $0x38] sm:$0xff] %v3638_v33  ;;  %v3636_v39 = vmax.f32 %v3604_v0, 0.0  ;;  %v3609_v41 = vadd.f32 %v3577_v36, %v3481_v40  ;;  %v3473_v16 = vadd.f32 %v6496_v15, %v3472_v17  ;;  %v5002_v33 = vld [vmem:[%s5106_s14 + $0x58] sm:$0xff]  }
 0x3a3   : > { %v4810_v32 = vpop.f32.mrf.mxu0  ;;  %v3589_v0 = vunpack.c.l.bf16 %v5002_v33 }
 0x3a4   : > { %3668 = vst [vmem:[%s6506_s13 + $0x28] sm:$0xff] %v3636_v39  ;;  %v3641_v43 = vmax.f32 %v3609_v41, 0.0  ;;  %v3607_v54 = vadd.f32 %v3575_v29, %v3473_v16  ;;  %v3484_v1 = vadd.f32 %v4810_v32, %v6496_v15  ;;  %v5003_v39 = vld [vmem:[%s5106_s14 + $0x50] sm:$0xff]  }
 0x3a5   : > { %v3475_v35 = vpop.f32.mrf.mxu0  ;;  %v3587_v41 = vunpack.c.l.bf16 %v5003_v39 }
 0x3a6   : > { %3673 = vst [vmem:[%s6506_s13 + $0x50] sm:$0xff] %v3641_v43  ;;  %v3639_v14 = vmax.f32 %v3607_v54, 0.0  ;;  %v3610_v10 = vadd.f32 %v3578_v2, %v3484_v1  ;;  %v3476_v37 = vadd.f32 %v6496_v15, %v3475_v35  ;;  %v3590_v54 = vunpack.c.h.bf16 %v5002_v33 }
 0x3a7   : > { %v4813_v31 = vpop.f32.mrf.mxu0 }
 0x3a8   : > { %3671 = vst [vmem:[%s6506_s13 + $0x40] sm:$0xff] %v3639_v14  ;;  %v3642_v47 = vmax.f32 %v3610_v10, 0.0  ;;  %v3608_v11 = vadd.f32 %v3576_v26, %v3476_v37  ;;  %v3497_v53 = vadd.f32 %v4813_v31, %v6496_v15  ;;  %v3588_v10 = vunpack.c.h.bf16 %v5003_v39 }
 0x3a9   : > { %v3488_v6 = vpop.f32.mrf.mxu0 }
 0x3aa   : > { %3674 = vst [vmem:[%s6506_s13 + $0x58] sm:$0xff] %v3642_v47  ;;  %v3640_v21 = vmax.f32 %v3608_v11, 0.0  ;;  %v3613_v56 = vadd.f32 %v3581_v48, %v3497_v53  ;;  %v3489_v30 = vadd.f32 %v6496_v15, %v3488_v6  ;;  %v5004_v47 = vld [vmem:[%s5106_s14 + $0x68] sm:$0xff]  }
 0x3ab   : > { %v4814_v52 = vpop.f32.mrf.mxu0  ;;  %v3593_v11 = vunpack.c.l.bf16 %v5004_v47 }
 0x3ac   : > { %3672 = vst [vmem:[%s6506_s13 + $0x48] sm:$0xff] %v3640_v21  ;;  %v3645_v27 = vmax.f32 %v3613_v56, 0.0  ;;  %v3611_v9 = vadd.f32 %v3579_v34, %v3489_v30  ;;  %v3500_v61 = vadd.f32 %v4814_v52, %v6496_v15  ;;  %v5005_v21 = vld [vmem:[%s5106_s14 + $0x60] sm:$0xff]  }
 0x3ad   : > { %v3491_v7 = vpop.f32.mrf.mxu0  ;;  %v3591_v56 = vunpack.c.l.bf16 %v5005_v21 }
 0x3ae   : > { %3677 = vst [vmem:[%s6506_s13 + $0x70] sm:$0xff] %v3645_v27  ;;  %v3643_v49 = vmax.f32 %v3611_v9, 0.0  ;;  %v3614_v50 = vadd.f32 %v3582_v4, %v3500_v61  ;;  %v3492_v42 = vadd.f32 %v6496_v15, %v3491_v7  ;;  %v3594_v9 = vunpack.c.h.bf16 %v5004_v47 }
 0x3af   : > { %v4817_v18 = vpop.f32.mrf.mxu0 }
 0x3b0   : > { %3675 = vst [vmem:[%s6506_s13 + $0x60] sm:$0xff] %v3643_v49  ;;  %v3646_v62 = vmax.f32 %v3614_v50, 0.0  ;;  %v3612_v46 = vadd.f32 %v3580_v24, %v3492_v42  ;;  %v3513_v38 = vadd.f32 %v4817_v18, %v6496_v15  ;;  %v3592_v50 = vunpack.c.h.bf16 %v5005_v21 }
 0x3b1   : > { %v3504_v44 = vpop.f32.mrf.mxu0 }
 0x3b2   : > { %3678 = vst [vmem:[%s6506_s13 + $0x78] sm:$0xff] %v3646_v62  ;;  %v3644_v20 = vmax.f32 %v3612_v46, 0.0  ;;  %v3617_v22 = vadd.f32 %v3585_v55, %v3513_v38  ;;  %v3505_v25 = vadd.f32 %v6496_v15, %v3504_v44 }
 0x3b3   : > { %v4818_v58 = vpop.f32.mrf.mxu0 }
 0x3b4   : > { %3676 = vst [vmem:[%s6506_s13 + $0x68] sm:$0xff] %v3644_v20  ;;  %v3649_v23 = vmax.f32 %v3617_v22, 0.0  ;;  %v3615_v19 = vadd.f32 %v3583_v63, %v3505_v25  ;;  %v3516_v3 = vadd.f32 %v4818_v58, %v6496_v15  ;;  %v3597_v63 = vunpack.c.l.bf16 %v5006_v45  ;;  %v5007_v20 = vld [vmem:[%s5106_s14 + $0x70] sm:$0xff]  }
 0x3b5   : > { %v3507_v51 = vpop.f32.mrf.mxu0  ;;  %v3595_v22 = vunpack.c.l.bf16 %v5007_v20 }
 0x3b6   : > { %3681 = vst [vmem:[%s6506_s13 + $0x90] sm:$0xff] %v3649_v23  ;;  %v3647_v59 = vmax.f32 %v3615_v19, 0.0  ;;  %v3618_v36 = vadd.f32 %v3586_v57, %v3516_v3  ;;  %v3508_v8 = vadd.f32 %v6496_v15, %v3507_v51  ;;  %v3598_v23 = vunpack.c.h.bf16 %v5006_v45 }
 0x3b7   : > { %v4821_v40 = vpop.f32.mrf.mxu0 }
 0x3b8   : > { %3679 = vst [vmem:[%s6506_s13 + $0x80] sm:$0xff] %v3647_v59  ;;  %v3650_v13 = vmax.f32 %v3618_v36, 0.0  ;;  %v3616_v29 = vadd.f32 %v3584_v5, %v3508_v8  ;;  %v3529_v17 = vadd.f32 %v4821_v40, %v6496_v15  ;;  %v3596_v36 = vunpack.c.h.bf16 %v5007_v20 }
 0x3b9   : > { %v3520_v16 = vpop.f32.mrf.mxu0 }
 0x3ba   : > { %3682 = vst [vmem:[%s6506_s13 + $0x98] sm:$0xff] %v3650_v13  ;;  %v3648_v2 = vmax.f32 %v3616_v29, 0.0  ;;  %v3621_v32 = vadd.f32 %v3589_v0, %v3529_v17  ;;  %v3521_v43 = vadd.f32 %v6496_v15, %v3520_v16 }
 0x3bb   : > { %v4822_v1 = vpop.f32.mrf.mxu0 }
 0x3bc   : > { %3680 = vst [vmem:[%s6506_s13 + $0x88] sm:$0xff] %v3648_v2  ;;  %v3653_v26 = vmax.f32 %v3621_v32, 0.0  ;;  %v3619_v35 = vadd.f32 %v3587_v41, %v3521_v43  ;;  %v3532_v14 = vadd.f32 %v4822_v1, %v6496_v15 }
 0x3bd   : > { %v3523_v37 = vpop.f32.mrf.mxu0 }
 0x3be   : > { %3685 = vst [vmem:[%s6506_s13 + $0xb0] sm:$0xff] %v3653_v26  ;;  %v3651_v60 = vmax.f32 %v3619_v35, 0.0  ;;  %v3622_v48 = vadd.f32 %v3590_v54, %v3532_v14  ;;  %v3524_v31 = vadd.f32 %v6496_v15, %v3523_v37 }
 0x3bf   : > { %v4825_v53 = vpop.f32.mrf.mxu0 }
 0x3c0   : > { %3683 = vst [vmem:[%s6506_s13 + $0xa0] sm:$0xff] %v3651_v60  ;;  %v3654_v12 = vmax.f32 %v3622_v48, 0.0  ;;  %v3620_v34 = vadd.f32 %v3588_v10, %v3524_v31  ;;  %v3545_v6 = vadd.f32 %v4825_v53, %v6496_v15 }
 0x3c1   : > { %v3536_v30 = vpop.f32.mrf.mxu0 }
 0x3c2   : > { %3686 = vst [vmem:[%s6506_s13 + $0xb8] sm:$0xff] %v3654_v12  ;;  %v3652_v4 = vmax.f32 %v3620_v34, 0.0  ;;  %v3625_v52 = vadd.f32 %v3593_v11, %v3545_v6  ;;  %v3537_v27 = vadd.f32 %v6496_v15, %v3536_v30 }
 0x3c3   : > { %v4826_v61 = vpop.f32.mrf.mxu0 }
 0x3c4   : > { %3684 = vst [vmem:[%s6506_s13 + $0xa8] sm:$0xff] %v3652_v4  ;;  %v3657_v24 = vmax.f32 %v3625_v52, 0.0  ;;  %v3623_v7 = vadd.f32 %v3591_v56, %v3537_v27  ;;  %v3548_v49 = vadd.f32 %v4826_v61, %v6496_v15 }
 0x3c5   : > { %v3539_v42 = vpop.f32.mrf.mxu0 }
 0x3c6   : > { %3689 = vst [vmem:[%s6506_s13 + $0xd0] sm:$0xff] %v3657_v24  ;;  %v3655_v28 = vmax.f32 %v3623_v7, 0.0  ;;  %v3626_v55 = vadd.f32 %v3594_v9, %v3548_v49  ;;  %v3540_v18 = vadd.f32 %v6496_v15, %v3539_v42 }
 0x3c7   : > { %v4829_v62 = vpop.f32.mrf.mxu0 }
 0x3c8   : > { %3687 = vst [vmem:[%s6506_s13 + $0xc0] sm:$0xff] %v3655_v28  ;;  %v3658_v46 = vmax.f32 %v3626_v55, 0.0  ;;  %v3624_v38 = vadd.f32 %v3592_v50, %v3540_v18  ;;  %v3561_v44 = vadd.f32 %v4829_v62, %v6496_v15 }
 0x3c9   : > { %v3552_v25 = vpop.f32.mrf.mxu0 }
 0x3ca   : > { %3690 = vst [vmem:[%s6506_s13 + $0xd8] sm:$0xff] %v3658_v46  ;;  %v3656_v57 = vmax.f32 %v3624_v38, 0.0  ;;  %v3629_v58 = vadd.f32 %v3597_v63, %v3561_v44  ;;  %v3553_v5 = vadd.f32 %v6496_v15, %v3552_v25 }
 0x3cb   : > { %v4830_v19 = vpop.f32.mrf.mxu0 }
 0x3cc   : > { %3688 = vst [vmem:[%s6506_s13 + $0xc8] sm:$0xff] %v3656_v57  ;;  %v3661_v3 = vmax.f32 %v3629_v58, 0.0  ;;  %v3627_v51 = vadd.f32 %v3595_v22, %v3553_v5  ;;  %v3564_v59 = vadd.f32 %v4830_v19, %v6496_v15 }
 0x3cd   : > { %v3555_v8 = vpop.f32.mrf.mxu0 }
 0x3ce   : > { %3693 = vst [vmem:[%s6506_s13 + $0xf0] sm:$0xff] %v3661_v3  ;;  %v3659_v33 = vmax.f32 %v3627_v51, 0.0  ;;  %v3630_v0 = vadd.f32 %v3598_v23, %v3564_v59  ;;  %v3556_v40 = vadd.f32 %v6496_v15, %v3555_v8 }
 0x3d0   : > { %3691 = vst [vmem:[%s6506_s13 + $0xe0] sm:$0xff] %v3659_v33  ;;  %v3662_v13 = vmax.f32 %v3630_v0, 0.0  ;;  %v3628_v29 = vadd.f32 %v3596_v36, %v3556_v40 }
 0x3d2   : > { %3694 = vst [vmem:[%s6506_s13 + $0xf8] sm:$0xff] %v3662_v13  ;;  %v3660_v17 = vmax.f32 %v3628_v29, 0.0 }
 0x3d4   : > { %3692 = vst [vmem:[%s6506_s13 + $0xe8] sm:$0xff] %v3660_v17 }
 0x3d5 PF: > { %s17_s26 = sadd.s32 1, %s5030_s26   ;;  %s6668_s24 = smov %s5026_s25 }
 0x3d6   : > { %p14_p5 = scmp.ge.s32.totalorder %s17_s26, 4   ;;  %s6669_s25 = smov %s6671_s27 }
 0x3d8   :  { %16 = sbr.rel (!%p14_p5) target bundleno = 2 (0x2), region = 86 }

</bundles_post_ra>
